<compile_context>
chip_gen: v5e
topology: v5e:2x2
jax: 0.10.0
libtpu: 0.0.40
codegen_flags: <defaults>
</compile_context>

<pallas_src>
import functools

import jax
import jax.numpy as jnp
from jax.experimental import pallas as pl
from jax.experimental.pallas import tpu as pltpu

LANE = 128
# Per-block byte budget (input tile + output tile).  Default 2-deep pipelining
# double-buffers this (~20 MiB), leaving headroom under v7x's 64 MiB VMEM.
_TARGET_BLOCK_BYTES = 10 * 1024 * 1024
_VMEM_LIMIT_BYTES = 40 * 1024 * 1024
# Below this many *output* bytes, plain XLA cast+scale beats the fixed
# pallas_call launch / dispatch overhead.
_MIN_PALLAS_OUT_BYTES = 1 << 20


def _to_tensor_kernel(x_ref, o_ref, *, scale):
    # Direct u8 -> f32 cast (no intermediate i32 widen: lower vreg pressure).
    x = x_ref[...].astype(jnp.float32)
    if scale != 1.0:            # compile-time Python constant
        x = x * scale
    o_ref[...] = x.astype(o_ref.dtype)


def _scale_cast(x: jax.Array, scale: float, out_dtype) -> jax.Array:
    """out = float32(x) * scale (elementwise), via a lane-dense Pallas kernel."""
    out_dtype = jnp.dtype(out_dtype)
    total = x.size

    # Small-input fast path: pure cast+scale is already roofline in XLA.
    if total * out_dtype.itemsize < _MIN_PALLAS_OUT_BYTES:
        y = x.astype(jnp.float32)
        if scale != 1.0:
            y = y * scale
        return y.astype(out_dtype)

    orig_shape = x.shape
    if total % LANE == 0:
        # Perfectly lane-dense flattening, no padding needed.
        lanes = LANE
    else:
        # No pad/slice copies: keep the natural trailing dim as the lane axis.
        # A full-extent last block dim is always legal; stores on the ragged
        # lane tail are masked, which is far cheaper than extra HBM passes.
        lanes = orig_shape[-1]
    rows = total // lanes
    x2 = x.reshape(rows, lanes)

    # Size the row tile from the per-block byte budget (in + out streams).
    row_tile = _TARGET_BLOCK_BYTES // (lanes * (x.dtype.itemsize + out_dtype.itemsize))
    row_tile = max(8, (row_tile // 8) * 8)          # multiple of 8 when tiling
    if row_tile >= rows:
        row_tile = rows                             # full extent: always legal
    grid = (pl.cdiv(rows, row_tile),)               # ragged last block is masked

    kernel = functools.partial(_to_tensor_kernel, scale=float(scale))

    out2 = pl.pallas_call(
        kernel,
        out_shape=jax.ShapeDtypeStruct((rows, lanes), out_dtype),
        grid_spec=pltpu.PrefetchScalarGridSpec(
            num_scalar_prefetch=0,
            grid=grid,
            in_specs=[pl.BlockSpec((row_tile, lanes), lambda i: (i, 0))],
            out_specs=pl.BlockSpec((row_tile, lanes), lambda i: (i, 0)),
        ),
        compiler_params=pltpu.CompilerParams(
            # TODO(synk): on v7x verify both TensorCores stream rows; if xprof
            # shows one idle, switch this axis to pltpu.CORE_PARALLEL.
            dimension_semantics=("parallel",),
            vmem_limit_bytes=_VMEM_LIMIT_BYTES,
            # Let XLA fuse the wrapper-side transpose/reshape producer chain
            # into the pallas input read (avoids a materialized, badly-tiled
            # transposed uint8 array in HBM when it fuses).
            allow_input_fusion=[True],
        ),
        cost_estimate=pl.CostEstimate(
            flops=total if scale != 1.0 else 0,
            transcendentals=0,
            bytes_accessed=total * (x.dtype.itemsize + out_dtype.itemsize),
        ),
    )(x2)

    return out2.reshape(orig_shape)


def _is_channel_first(shape) -> bool:
    ndim = len(shape)
    if ndim == 4:
        _, s1, s2, s3 = shape
        if s1 < s2 and s1 < s3:
            return True
        if s3 < s1 and s3 < s2:
            return False
    elif ndim == 3:
        s0, s1, s2 = shape
        if s0 < s1 and s0 < s2:
            return True
        if s2 < s0 and s2 < s1:
            return False
    raise ValueError(f"Cannot infer channel order for shape {shape}.")


def to_channel_first(image: jax.Array, keep_dims: bool = True) -> jax.Array:
    """HWC -> CHW / BHWC -> BCHW.  Layout plumbing: jnp.transpose on source dtype."""
    if image.ndim == 2:
        image = image[None, ...]                         # (H, W) -> (1, H, W)
    elif image.ndim == 3:
        if not _is_channel_first(image.shape):
            image = jnp.transpose(image, (2, 0, 1))      # HWC  -> CHW
    elif image.ndim == 4:
        if not _is_channel_first(image.shape):
            image = jnp.transpose(image, (0, 3, 1, 2))   # BHWC -> BCHW
        keep_dims = True
    else:
        raise ValueError(f"`image.ndim` must be == 2, 3, or 4. But got: {image.ndim}.")
    return image if keep_dims else image[None, ...]


def to_tensor(image: jax.Array, keep_dims: bool = True,
              normalize: bool = False) -> jax.Array:
    if image.ndim > 4 or image.ndim < 2:
        raise ValueError(f"`image.ndim` must be == 2, 3, or 4. But got: {image.ndim}.")
    img = to_channel_first(image, keep_dims=keep_dims)
    if normalize:
        # TODO(synk): normalize_naive's exact tensor dispatch (possible dtype /
        # value-range gating) is not shown in the spec; we implement the
        # documented [0,255] -> [0,1] scaling.
        return _scale_cast(img, 1.0 / 255.0, jnp.float32)
    if img.dtype == jnp.uint8:                           # ByteTensor -> default dtype
        return _scale_cast(img, 1.0, jnp.float32)
    return img                                           # layout change only


class ToTensor:
    """JAX/Pallas equivalent of the PyTorch ToTensor module."""

    def __init__(self, keep_dims: bool = False, normalize: bool = False):
        self.keep_dims = bool(keep_dims)
        self.normalize = bool(normalize)

    def __call__(self, image: jax.Array) -> jax.Array:
        return to_tensor(image, self.keep_dims, self.normalize)


if __name__ == "__main__":
    key = jax.random.PRNGKey(0)
    k1, k2 = jax.random.split(key)

    # 1) Batched RGB uint8 image, normalize=True: BHWC -> BCHW float32 in [0,1].
    #    Large enough to take the Pallas path (lane-dense branch, total % 128 == 0).
    B, H, W, C = 2, 224, 224, 3
    image = jax.random.randint(k1, (B, H, W, C), 0, 256, dtype=jnp.int32).astype(jnp.uint8)
    out = jax.block_until_ready(ToTensor(keep_dims=False, normalize=True)(image))
    ref = jnp.transpose(image.astype(jnp.float32), (0, 3, 1, 2)) * (1.0 / 255.0)
    assert out.shape == (B, C, H, W)
    assert out.dtype == jnp.float32
    assert jnp.allclose(out, ref, atol=1e-6, rtol=1e-6)

    # 2) Non-128-divisible total: exercises the no-pad, full-extent-lane branch.
    img_r = jax.random.randint(k2, (2, 250, 250, 3), 0, 256, dtype=jnp.int32).astype(jnp.uint8)
    out_r = jax.block_until_ready(ToTensor(keep_dims=False, normalize=True)(img_r))
    ref_r = jnp.transpose(img_r.astype(jnp.float32), (0, 3, 1, 2)) * (1.0 / 255.0)
    assert out_r.shape == (2, 3, 250, 250)
    assert jnp.allclose(out_r, ref_r, atol=1e-6, rtol=1e-6)

    # 3) Small single HWC uint8 image, normalize=False: uint8 -> float32 cast via
    #    the small-input XLA fast path, batch dim added (keep_dims=False).
    img3 = image[0, :16, :16, :]
    out3 = jax.block_until_ready(ToTensor(keep_dims=False, normalize=False)(img3))
    ref3 = jnp.transpose(img3.astype(jnp.float32), (2, 0, 1))[None, ...]
    assert out3.shape == (1, C, 16, 16)
    assert out3.dtype == jnp.float32
    assert jnp.allclose(out3, ref3)

    print("KERNEL_OK")
</pallas_src>

<mosaic_0001>
module attributes {stable_mosaic.version = 11 : i64} {
  func.func @_to_tensor_kernel(%arg0: i32, %arg1: memref<2352x128xi8, #tpu.memory_space<vmem>>, %arg2: memref<2352x128xf32, #tpu.memory_space<vmem>>) attributes {dimension_semantics = [#tpu.dimension_semantics<parallel>], iteration_bounds = array<i64: 1>, scalar_prefetch = 0 : i64, scratch_operands = 0 : i64, tpu.core_type = #tpu.core_type<tc>, window_params = [{transform_indices = @transform_0, window_bounds = array<i64: 2352, 128>}, {transform_indices = @transform_1, window_bounds = array<i64: 2352, 128>}]} {
    %c0 = arith.constant 0 : index
    %c0_0 = arith.constant 0 : index
    %0 = vector.load %arg1[%c0, %c0_0] : memref<2352x128xi8, #tpu.memory_space<vmem>>, vector<2352x128xi8>
    %1 = arith.uitofp %0 : vector<2352x128xi8> to vector<2352x128xf32>
    %cst = arith.constant 0.00392156886 : f32
    %2 = vector.broadcast %cst : f32 to vector<2352x128xf32>
    %3 = arith.mulf %1, %2 : vector<2352x128xf32>
    %c0_1 = arith.constant 0 : index
    %c0_2 = arith.constant 0 : index
    %4 = vector.load %arg2[%c0_1, %c0_2] : memref<2352x128xf32, #tpu.memory_space<vmem>>, vector<2352x128xf32>
    tpu.vector_store %arg2[%c0_1, %c0_2], %3 {strides = array<i32>} : memref<2352x128xf32, #tpu.memory_space<vmem>>, vector<2352x128xf32>,
    return
  }
  func.func @transform_0(%arg0: i32) -> (i32, i32) {
    %c0_i32 = arith.constant 0 : i32
    %c0_i32_0 = arith.constant 0 : i32
    return %arg0, %c0_i32 : i32, i32
  }
  func.func @transform_1(%arg0: i32) -> (i32, i32) {
    %c0_i32 = arith.constant 0 : i32
    %c0_i32_0 = arith.constant 0 : i32
    return %arg0, %c0_i32 : i32, i32
  }
}

</mosaic_0001>

<bundles_post_ra>
// kernel: tpu_custom_call.1
= control target key start
LH: loop header
LB: loop body
LE: loop exit
PB: predicated region body
PF: predicated region fallthrough
CT: control target
= control target key end

     0   :  { %6 = vsyncpa [#allocation3], 0  ;;  %s2622_s0 = inlined_call_operand.hbm [shape: u8[2352,128], index: 0, kind: input, shape index: {}]   ;;  %s2623_s1 = inlined_call_operand.hbm [shape: f32[2352,128], index: 1, kind: output, shape index: {}]  }
   0x1   :  { %7 = vsyncpa [#allocation4], 0  ;;  %s12_s8 = sshll.u32 %s2622_s0, 4  ;;  %s2600_s9 = smov [#allocation2]   ;;  %s13_s8 = int_to_ptr.hbm [resolvable:$true] %s12_s8 }
   0x2   :  { %s14_s10 = sshll.u32 %s2600_s9, 4  ;;  %s2601_s11 = smov 32   ;;  %s15_s10 = int_to_ptr.vmem [resolvable:$true] %s14_s10 }
   0x3   :  { %s2602_s12 = smov 2  }
   0x4   :  { %20 = dma.hbm_to_vmem [thread:$0]  %s13_s8, 9408, %s15_s10, [#allocation3], %s2601_s11, %s2601_s11, %s2602_s12  }
   0x5   :  { %2596 = dma.done.wait [#allocation3], 9408  }
   0x6   :  { %2597 = vsyncadd [#allocation3], 4294957888  ;;  %v1809_v0 = vld [vmem:[#allocation2] sm:$0xff]   ;;  %v2397_v1 = vld [vmem:[#allocation2 + $0x8] sm:$0xff]   ;;  %s2603_s0 = smov [#allocation5]   ;;  %s1795_s16 = sshll.u32 %s2623_s1, 4  ;;  %s1796_s16 = int_to_ptr.hbm [resolvable:$true] %s1795_s16 }
   0x7   :  { %v1810_v2 = vunpack.c.0.s8 %v1809_v0  ;;  %v1811_v3 = vunpack.c.1.s8 %v1809_v0  ;;  %v1814_v4 = vunpack.c.2.s8 %v1809_v0  ;;  %v1815_v5 = vunpack.c.3.s8 %v1809_v0  ;;  %v2399_v18 = vld [vmem:[#allocation2 + $0x10] sm:$0xff]   ;;  %v2401_v27 = vld [vmem:[#allocation2 + $0x18] sm:$0xff]   ;;  %v2403_v52 = vld [vmem:[#allocation2 + $0x20] sm:$0xff]   ;;  %s1793_s13 = sshll.u32 %s2603_s0, 4  ;;  %s2604_s17 = smov 128   ;;  %s1794_s13 = int_to_ptr.vmem [resolvable:$true] %s1793_s13 }
   0x8   :  { %v1818_v6 = vunpack.c.0.s8 %v2397_v1  ;;  %v1819_v7 = vunpack.c.1.s8 %v2397_v1  ;;  %v1822_v8 = vunpack.c.2.s8 %v2397_v1  ;;  %v1823_v9 = vunpack.c.3.s8 %v2397_v1  ;;  %v2405_v1 = vld [vmem:[#allocation2 + $0x28] sm:$0xff]   ;;  %s2605_s18 = smov 8  }
   0x9   :  { %v613_v10 = vand.u32 255, %v1810_v2  ;;  %v614_v11 = vand.u32 255, %v1811_v3  ;;  %v615_v12 = vand.u32 255, %v1814_v4  ;;  %v616_v13 = vand.u32 255, %v1815_v5 }
   0xa   :  { %v617_v14 = vand.u32 255, %v1818_v6  ;;  %v618_v15 = vand.u32 255, %v1819_v7  ;;  %v619_v16 = vand.u32 255, %v1822_v8  ;;  %v620_v17 = vand.u32 255, %v1823_v9 }
   0xb   :  { %v907_v19 = vcvt.s32.f32 %v613_v10  ;;  %v908_v20 = vcvt.s32.f32 %v614_v11  ;;  %v909_v21 = vcvt.s32.f32 %v615_v12  ;;  %v910_v22 = vcvt.s32.f32 %v616_v13 }
   0xc   :  { %v911_v23 = vcvt.s32.f32 %v617_v14  ;;  %v912_v24 = vcvt.s32.f32 %v618_v15  ;;  %v913_v25 = vcvt.s32.f32 %v619_v16  ;;  %v914_v26 = vcvt.s32.f32 %v620_v17 }
   0xd   :  { %v1201_v28 = vmul.f32 0.003921569, %v907_v19  ;;  %v1202_v29 = vmul.f32 0.003921569, %v908_v20  ;;  %v1203_v30 = vmul.f32 0.003921569, %v909_v21  ;;  %v1826_v31 = vunpack.c.0.s8 %v2399_v18 }
   0xe   :  { %v1204_v32 = vmul.f32 0.003921569, %v910_v22  ;;  %v1205_v33 = vmul.f32 0.003921569, %v911_v23  ;;  %v1206_v34 = vmul.f32 0.003921569, %v912_v24  ;;  %v1827_v35 = vunpack.c.1.s8 %v2399_v18 }
   0xf   :  { %1495 = vst [vmem:[#allocation5] sm:$0xff] %v1201_v28  ;;  %v1207_v36 = vmul.f32 0.003921569, %v913_v25  ;;  %v1208_v37 = vmul.f32 0.003921569, %v914_v26  ;;  %v621_v38 = vand.u32 255, %v1826_v31  ;;  %v1830_v39 = vunpack.c.2.s8 %v2399_v18 }
  0x10   :  { %1496 = vst [vmem:[#allocation5 + $0x8] sm:$0xff] %v1202_v29  ;;  %v622_v40 = vand.u32 255, %v1827_v35  ;;  %v1831_v41 = vunpack.c.3.s8 %v2399_v18  ;;  %v1834_v42 = vunpack.c.0.s8 %v2401_v27  ;;  %v1835_v43 = vunpack.c.1.s8 %v2401_v27  ;;  %v2407_v22 = vld [vmem:[#allocation2 + $0x30] sm:$0xff]   ;;  %v2409_v35 = vld [vmem:[#allocation2 + $0x38] sm:$0xff]  }
  0x11   :  { %1497 = vst [vmem:[#allocation5 + $0x10] sm:$0xff] %v1203_v30  ;;  %v915_v44 = vcvt.s32.f32 %v621_v38  ;;  %v623_v45 = vand.u32 255, %v1830_v39  ;;  %v1838_v46 = vunpack.c.2.s8 %v2401_v27  ;;  %v1839_v47 = vunpack.c.3.s8 %v2401_v27 }
  0x12   :  { %1498 = vst [vmem:[#allocation5 + $0x18] sm:$0xff] %v1204_v32  ;;  %v916_v48 = vcvt.s32.f32 %v622_v40  ;;  %v624_v49 = vand.u32 255, %v1831_v41  ;;  %v625_v50 = vand.u32 255, %v1834_v42  ;;  %v626_v51 = vand.u32 255, %v1835_v43 }
  0x13   :  { %1499 = vst [vmem:[#allocation5 + $0x20] sm:$0xff] %v1205_v33  ;;  %v1209_v53 = vmul.f32 0.003921569, %v915_v44  ;;  %v917_v54 = vcvt.s32.f32 %v623_v45  ;;  %v627_v55 = vand.u32 255, %v1838_v46  ;;  %v628_v56 = vand.u32 255, %v1839_v47 }
  0x14   :  { %1500 = vst [vmem:[#allocation5 + $0x28] sm:$0xff] %v1206_v34  ;;  %v1210_v57 = vmul.f32 0.003921569, %v916_v48  ;;  %v918_v58 = vcvt.s32.f32 %v624_v49  ;;  %v919_v59 = vcvt.s32.f32 %v625_v50  ;;  %v920_v60 = vcvt.s32.f32 %v626_v51 }
  0x15   :  { %1501 = vst [vmem:[#allocation5 + $0x30] sm:$0xff] %v1207_v36  ;;  %v1211_v61 = vmul.f32 0.003921569, %v917_v54  ;;  %v921_v62 = vcvt.s32.f32 %v627_v55  ;;  %v922_v63 = vcvt.s32.f32 %v628_v56  ;;  %v1842_v0 = vunpack.c.0.s8 %v2403_v52  ;;  %v2411_v56 = vld [vmem:[#allocation2 + $0x40] sm:$0xff]  }
  0x16   :  { %1502 = vst [vmem:[#allocation5 + $0x38] sm:$0xff] %v1208_v37  ;;  %v1212_v2 = vmul.f32 0.003921569, %v918_v58  ;;  %v1213_v3 = vmul.f32 0.003921569, %v919_v59  ;;  %v1843_v4 = vunpack.c.1.s8 %v2403_v52  ;;  %v1846_v5 = vunpack.c.2.s8 %v2403_v52 }
  0x17   :  { %1503 = vst [vmem:[#allocation5 + $0x40] sm:$0xff] %v1209_v53  ;;  %v1214_v6 = vmul.f32 0.003921569, %v920_v60  ;;  %v1215_v7 = vmul.f32 0.003921569, %v921_v62  ;;  %v629_v8 = vand.u32 255, %v1842_v0  ;;  %v1847_v9 = vunpack.c.3.s8 %v2403_v52 }
  0x18   :  { %1504 = vst [vmem:[#allocation5 + $0x48] sm:$0xff] %v1210_v57  ;;  %v1216_v10 = vmul.f32 0.003921569, %v922_v63  ;;  %v630_v11 = vand.u32 255, %v1843_v4  ;;  %v631_v12 = vand.u32 255, %v1846_v5  ;;  %v1850_v13 = vunpack.c.0.s8 %v2405_v1  ;;  %v2413_v5 = vld [vmem:[#allocation2 + $0x48] sm:$0xff]  }
  0x19   :  { %1505 = vst [vmem:[#allocation5 + $0x50] sm:$0xff] %v1211_v61  ;;  %v923_v14 = vcvt.s32.f32 %v629_v8  ;;  %v632_v15 = vand.u32 255, %v1847_v9  ;;  %v1851_v16 = vunpack.c.1.s8 %v2405_v1  ;;  %v1854_v17 = vunpack.c.2.s8 %v2405_v1 }
  0x1a   :  { %1506 = vst [vmem:[#allocation5 + $0x58] sm:$0xff] %v1212_v2  ;;  %v924_v18 = vcvt.s32.f32 %v630_v11  ;;  %v925_v19 = vcvt.s32.f32 %v631_v12  ;;  %v633_v20 = vand.u32 255, %v1850_v13  ;;  %v1855_v21 = vunpack.c.3.s8 %v2405_v1 }
  0x1b   :  { %1507 = vst [vmem:[#allocation5 + $0x60] sm:$0xff] %v1213_v3  ;;  %v1217_v23 = vmul.f32 0.003921569, %v923_v14  ;;  %v926_v24 = vcvt.s32.f32 %v632_v15  ;;  %v634_v25 = vand.u32 255, %v1851_v16  ;;  %v635_v26 = vand.u32 255, %v1854_v17 }
  0x1c   :  { %1508 = vst [vmem:[#allocation5 + $0x68] sm:$0xff] %v1214_v6  ;;  %v1218_v27 = vmul.f32 0.003921569, %v924_v18  ;;  %v1219_v28 = vmul.f32 0.003921569, %v925_v19  ;;  %v927_v29 = vcvt.s32.f32 %v633_v20  ;;  %v636_v30 = vand.u32 255, %v1855_v21 }
  0x1d   :  { %1509 = vst [vmem:[#allocation5 + $0x70] sm:$0xff] %v1215_v7  ;;  %v1220_v31 = vmul.f32 0.003921569, %v926_v24  ;;  %v928_v32 = vcvt.s32.f32 %v634_v25  ;;  %v929_v33 = vcvt.s32.f32 %v635_v26  ;;  %v1858_v34 = vunpack.c.0.s8 %v2407_v22  ;;  %v2415_v26 = vld [vmem:[#allocation2 + $0x50] sm:$0xff]  }
  0x1e   :  { %1510 = vst [vmem:[#allocation5 + $0x78] sm:$0xff] %v1216_v10  ;;  %v1221_v36 = vmul.f32 0.003921569, %v927_v29  ;;  %v930_v37 = vcvt.s32.f32 %v636_v30  ;;  %v1859_v38 = vunpack.c.1.s8 %v2407_v22  ;;  %v1862_v39 = vunpack.c.2.s8 %v2407_v22 }
  0x1f   :  { %1511 = vst [vmem:[#allocation5 + $0x80] sm:$0xff] %v1217_v23  ;;  %v1222_v40 = vmul.f32 0.003921569, %v928_v32  ;;  %v1223_v41 = vmul.f32 0.003921569, %v929_v33  ;;  %v637_v42 = vand.u32 255, %v1858_v34  ;;  %v1863_v43 = vunpack.c.3.s8 %v2407_v22 }
  0x20   :  { %1512 = vst [vmem:[#allocation5 + $0x88] sm:$0xff] %v1218_v27  ;;  %v1224_v44 = vmul.f32 0.003921569, %v930_v37  ;;  %v638_v45 = vand.u32 255, %v1859_v38  ;;  %v639_v46 = vand.u32 255, %v1862_v39  ;;  %v1866_v47 = vunpack.c.0.s8 %v2409_v35  ;;  %v2417_v39 = vld [vmem:[#allocation2 + $0x58] sm:$0xff]  }
  0x21   :  { %1513 = vst [vmem:[#allocation5 + $0x90] sm:$0xff] %v1219_v28  ;;  %v931_v48 = vcvt.s32.f32 %v637_v42  ;;  %v640_v49 = vand.u32 255, %v1863_v43  ;;  %v1867_v50 = vunpack.c.1.s8 %v2409_v35  ;;  %v1870_v51 = vunpack.c.2.s8 %v2409_v35 }
  0x22   :  { %1514 = vst [vmem:[#allocation5 + $0x98] sm:$0xff] %v1220_v31  ;;  %v932_v52 = vcvt.s32.f32 %v638_v45  ;;  %v933_v53 = vcvt.s32.f32 %v639_v46  ;;  %v641_v54 = vand.u32 255, %v1866_v47  ;;  %v1871_v55 = vunpack.c.3.s8 %v2409_v35 }
  0x23   :  { %1515 = vst [vmem:[#allocation5 + $0xa0] sm:$0xff] %v1221_v36  ;;  %v1225_v57 = vmul.f32 0.003921569, %v931_v48  ;;  %v934_v58 = vcvt.s32.f32 %v640_v49  ;;  %v642_v59 = vand.u32 255, %v1867_v50  ;;  %v643_v60 = vand.u32 255, %v1870_v51 }
  0x24   :  { %1516 = vst [vmem:[#allocation5 + $0xa8] sm:$0xff] %v1222_v40  ;;  %v1226_v61 = vmul.f32 0.003921569, %v932_v52  ;;  %v1227_v62 = vmul.f32 0.003921569, %v933_v53  ;;  %v935_v63 = vcvt.s32.f32 %v641_v54  ;;  %v644_v0 = vand.u32 255, %v1871_v55 }
  0x25   :  { %1517 = vst [vmem:[#allocation5 + $0xb0] sm:$0xff] %v1223_v41  ;;  %v1228_v1 = vmul.f32 0.003921569, %v934_v58  ;;  %v936_v2 = vcvt.s32.f32 %v642_v59  ;;  %v937_v3 = vcvt.s32.f32 %v643_v60  ;;  %v1874_v4 = vunpack.c.0.s8 %v2411_v56  ;;  %v2419_v60 = vld [vmem:[#allocation2 + $0x60] sm:$0xff]  }
  0x26   :  { %1518 = vst [vmem:[#allocation5 + $0xb8] sm:$0xff] %v1224_v44  ;;  %v1229_v6 = vmul.f32 0.003921569, %v935_v63  ;;  %v938_v7 = vcvt.s32.f32 %v644_v0  ;;  %v1875_v8 = vunpack.c.1.s8 %v2411_v56  ;;  %v1878_v9 = vunpack.c.2.s8 %v2411_v56 }
  0x27   :  { %1519 = vst [vmem:[#allocation5 + $0xc0] sm:$0xff] %v1225_v57  ;;  %v1230_v10 = vmul.f32 0.003921569, %v936_v2  ;;  %v1231_v11 = vmul.f32 0.003921569, %v937_v3  ;;  %v645_v12 = vand.u32 255, %v1874_v4  ;;  %v1879_v13 = vunpack.c.3.s8 %v2411_v56 }
  0x28   :  { %1520 = vst [vmem:[#allocation5 + $0xc8] sm:$0xff] %v1226_v61  ;;  %v1232_v14 = vmul.f32 0.003921569, %v938_v7  ;;  %v646_v15 = vand.u32 255, %v1875_v8  ;;  %v647_v16 = vand.u32 255, %v1878_v9  ;;  %v1882_v17 = vunpack.c.0.s8 %v2413_v5  ;;  %v2421_v9 = vld [vmem:[#allocation2 + $0x68] sm:$0xff]  }
  0x29   :  { %1521 = vst [vmem:[#allocation5 + $0xd0] sm:$0xff] %v1227_v62  ;;  %v939_v18 = vcvt.s32.f32 %v645_v12  ;;  %v648_v19 = vand.u32 255, %v1879_v13  ;;  %v1883_v20 = vunpack.c.1.s8 %v2413_v5  ;;  %v1886_v21 = vunpack.c.2.s8 %v2413_v5 }
  0x2a   :  { %1522 = vst [vmem:[#allocation5 + $0xd8] sm:$0xff] %v1228_v1  ;;  %v940_v22 = vcvt.s32.f32 %v646_v15  ;;  %v941_v23 = vcvt.s32.f32 %v647_v16  ;;  %v649_v24 = vand.u32 255, %v1882_v17  ;;  %v1887_v25 = vunpack.c.3.s8 %v2413_v5 }
  0x2b   :  { %1523 = vst [vmem:[#allocation5 + $0xe0] sm:$0xff] %v1229_v6  ;;  %v1233_v27 = vmul.f32 0.003921569, %v939_v18  ;;  %v942_v28 = vcvt.s32.f32 %v648_v19  ;;  %v650_v29 = vand.u32 255, %v1883_v20  ;;  %v651_v30 = vand.u32 255, %v1886_v21 }
  0x2c   :  { %1524 = vst [vmem:[#allocation5 + $0xe8] sm:$0xff] %v1230_v10  ;;  %v1234_v31 = vmul.f32 0.003921569, %v940_v22  ;;  %v1235_v32 = vmul.f32 0.003921569, %v941_v23  ;;  %v943_v33 = vcvt.s32.f32 %v649_v24  ;;  %v652_v34 = vand.u32 255, %v1887_v25 }
  0x2d   :  { %1525 = vst [vmem:[#allocation5 + $0xf0] sm:$0xff] %v1231_v11  ;;  %v1236_v35 = vmul.f32 0.003921569, %v942_v28  ;;  %v944_v36 = vcvt.s32.f32 %v650_v29  ;;  %v945_v37 = vcvt.s32.f32 %v651_v30  ;;  %v1890_v38 = vunpack.c.0.s8 %v2415_v26  ;;  %v2423_v30 = vld [vmem:[#allocation2 + $0x70] sm:$0xff]  }
  0x2e   :  { %1526 = vst [vmem:[#allocation5 + $0xf8] sm:$0xff] %v1232_v14  ;;  %v1237_v40 = vmul.f32 0.003921569, %v943_v33  ;;  %v946_v41 = vcvt.s32.f32 %v652_v34  ;;  %v1891_v42 = vunpack.c.1.s8 %v2415_v26  ;;  %v1894_v43 = vunpack.c.2.s8 %v2415_v26 }
  0x2f   :  { %1527 = vst [vmem:[#allocation5 + $0x100] sm:$0xff] %v1233_v27  ;;  %v1238_v44 = vmul.f32 0.003921569, %v944_v36  ;;  %v1239_v45 = vmul.f32 0.003921569, %v945_v37  ;;  %v653_v46 = vand.u32 255, %v1890_v38  ;;  %v1895_v47 = vunpack.c.3.s8 %v2415_v26 }
  0x30   :  { %1528 = vst [vmem:[#allocation5 + $0x108] sm:$0xff] %v1234_v31  ;;  %v1240_v48 = vmul.f32 0.003921569, %v946_v41  ;;  %v654_v49 = vand.u32 255, %v1891_v42  ;;  %v655_v50 = vand.u32 255, %v1894_v43  ;;  %v1898_v51 = vunpack.c.0.s8 %v2417_v39  ;;  %v2425_v43 = vld [vmem:[#allocation2 + $0x78] sm:$0xff]  }
  0x31   :  { %1529 = vst [vmem:[#allocation5 + $0x110] sm:$0xff] %v1235_v32  ;;  %v947_v52 = vcvt.s32.f32 %v653_v46  ;;  %v656_v53 = vand.u32 255, %v1895_v47  ;;  %v1899_v54 = vunpack.c.1.s8 %v2417_v39  ;;  %v1902_v55 = vunpack.c.2.s8 %v2417_v39 }
  0x32   :  { %1530 = vst [vmem:[#allocation5 + $0x118] sm:$0xff] %v1236_v35  ;;  %v948_v56 = vcvt.s32.f32 %v654_v49  ;;  %v949_v57 = vcvt.s32.f32 %v655_v50  ;;  %v657_v58 = vand.u32 255, %v1898_v51  ;;  %v1903_v59 = vunpack.c.3.s8 %v2417_v39 }
  0x33   :  { %1531 = vst [vmem:[#allocation5 + $0x120] sm:$0xff] %v1237_v40  ;;  %v1241_v61 = vmul.f32 0.003921569, %v947_v52  ;;  %v950_v62 = vcvt.s32.f32 %v656_v53  ;;  %v658_v63 = vand.u32 255, %v1899_v54  ;;  %v659_v0 = vand.u32 255, %v1902_v55 }
  0x34   :  { %1532 = vst [vmem:[#allocation5 + $0x128] sm:$0xff] %v1238_v44  ;;  %v1242_v1 = vmul.f32 0.003921569, %v948_v56  ;;  %v1243_v2 = vmul.f32 0.003921569, %v949_v57  ;;  %v951_v3 = vcvt.s32.f32 %v657_v58  ;;  %v660_v4 = vand.u32 255, %v1903_v59 }
  0x35   :  { %1533 = vst [vmem:[#allocation5 + $0x130] sm:$0xff] %v1239_v45  ;;  %v1244_v5 = vmul.f32 0.003921569, %v950_v62  ;;  %v952_v6 = vcvt.s32.f32 %v658_v63  ;;  %v953_v7 = vcvt.s32.f32 %v659_v0  ;;  %v1906_v8 = vunpack.c.0.s8 %v2419_v60  ;;  %v2427_v0 = vld [vmem:[#allocation2 + $0x80] sm:$0xff]  }
  0x36   :  { %1534 = vst [vmem:[#allocation5 + $0x138] sm:$0xff] %v1240_v48  ;;  %v1245_v10 = vmul.f32 0.003921569, %v951_v3  ;;  %v954_v11 = vcvt.s32.f32 %v660_v4  ;;  %v1907_v12 = vunpack.c.1.s8 %v2419_v60  ;;  %v1910_v13 = vunpack.c.2.s8 %v2419_v60 }
  0x37   :  { %1535 = vst [vmem:[#allocation5 + $0x140] sm:$0xff] %v1241_v61  ;;  %v1246_v14 = vmul.f32 0.003921569, %v952_v6  ;;  %v1247_v15 = vmul.f32 0.003921569, %v953_v7  ;;  %v661_v16 = vand.u32 255, %v1906_v8  ;;  %v1911_v17 = vunpack.c.3.s8 %v2419_v60 }
  0x38   :  { %1536 = vst [vmem:[#allocation5 + $0x148] sm:$0xff] %v1242_v1  ;;  %v1248_v18 = vmul.f32 0.003921569, %v954_v11  ;;  %v662_v19 = vand.u32 255, %v1907_v12  ;;  %v663_v20 = vand.u32 255, %v1910_v13  ;;  %v1914_v21 = vunpack.c.0.s8 %v2421_v9  ;;  %v2429_v13 = vld [vmem:[#allocation2 + $0x88] sm:$0xff]  }
  0x39   :  { %1537 = vst [vmem:[#allocation5 + $0x150] sm:$0xff] %v1243_v2  ;;  %v955_v22 = vcvt.s32.f32 %v661_v16  ;;  %v664_v23 = vand.u32 255, %v1911_v17  ;;  %v1915_v24 = vunpack.c.1.s8 %v2421_v9  ;;  %v1918_v25 = vunpack.c.2.s8 %v2421_v9 }
  0x3a   :  { %1538 = vst [vmem:[#allocation5 + $0x158] sm:$0xff] %v1244_v5  ;;  %v956_v26 = vcvt.s32.f32 %v662_v19  ;;  %v957_v27 = vcvt.s32.f32 %v663_v20  ;;  %v665_v28 = vand.u32 255, %v1914_v21  ;;  %v1919_v29 = vunpack.c.3.s8 %v2421_v9 }
  0x3b   :  { %1539 = vst [vmem:[#allocation5 + $0x160] sm:$0xff] %v1245_v10  ;;  %v1249_v31 = vmul.f32 0.003921569, %v955_v22  ;;  %v958_v32 = vcvt.s32.f32 %v664_v23  ;;  %v666_v33 = vand.u32 255, %v1915_v24  ;;  %v667_v34 = vand.u32 255, %v1918_v25 }
  0x3c   :  { %1540 = vst [vmem:[#allocation5 + $0x168] sm:$0xff] %v1246_v14  ;;  %v1250_v35 = vmul.f32 0.003921569, %v956_v26  ;;  %v1251_v36 = vmul.f32 0.003921569, %v957_v27  ;;  %v959_v37 = vcvt.s32.f32 %v665_v28  ;;  %v668_v38 = vand.u32 255, %v1919_v29 }
  0x3d   :  { %1541 = vst [vmem:[#allocation5 + $0x170] sm:$0xff] %v1247_v15  ;;  %v1252_v39 = vmul.f32 0.003921569, %v958_v32  ;;  %v960_v40 = vcvt.s32.f32 %v666_v33  ;;  %v961_v41 = vcvt.s32.f32 %v667_v34  ;;  %v1922_v42 = vunpack.c.0.s8 %v2423_v30  ;;  %v2431_v34 = vld [vmem:[#allocation2 + $0x90] sm:$0xff]  }
  0x3e   :  { %1542 = vst [vmem:[#allocation5 + $0x178] sm:$0xff] %v1248_v18  ;;  %v1253_v44 = vmul.f32 0.003921569, %v959_v37  ;;  %v962_v45 = vcvt.s32.f32 %v668_v38  ;;  %v1923_v46 = vunpack.c.1.s8 %v2423_v30  ;;  %v1926_v47 = vunpack.c.2.s8 %v2423_v30 }
  0x3f   :  { %1543 = vst [vmem:[#allocation5 + $0x180] sm:$0xff] %v1249_v31  ;;  %v1254_v48 = vmul.f32 0.003921569, %v960_v40  ;;  %v1255_v49 = vmul.f32 0.003921569, %v961_v41  ;;  %v669_v50 = vand.u32 255, %v1922_v42  ;;  %v1927_v51 = vunpack.c.3.s8 %v2423_v30 }
  0x40   :  { %1544 = vst [vmem:[#allocation5 + $0x188] sm:$0xff] %v1250_v35  ;;  %v1256_v52 = vmul.f32 0.003921569, %v962_v45  ;;  %v670_v53 = vand.u32 255, %v1923_v46  ;;  %v671_v54 = vand.u32 255, %v1926_v47  ;;  %v1930_v55 = vunpack.c.0.s8 %v2425_v43  ;;  %v2433_v47 = vld [vmem:[#allocation2 + $0x98] sm:$0xff]  }
  0x41   :  { %1545 = vst [vmem:[#allocation5 + $0x190] sm:$0xff] %v1251_v36  ;;  %v963_v56 = vcvt.s32.f32 %v669_v50  ;;  %v672_v57 = vand.u32 255, %v1927_v51  ;;  %v1931_v58 = vunpack.c.1.s8 %v2425_v43  ;;  %v1934_v59 = vunpack.c.2.s8 %v2425_v43 }
  0x42   :  { %1546 = vst [vmem:[#allocation5 + $0x198] sm:$0xff] %v1252_v39  ;;  %v964_v60 = vcvt.s32.f32 %v670_v53  ;;  %v965_v61 = vcvt.s32.f32 %v671_v54  ;;  %v673_v62 = vand.u32 255, %v1930_v55  ;;  %v1935_v63 = vunpack.c.3.s8 %v2425_v43 }
  0x43   :  { %1547 = vst [vmem:[#allocation5 + $0x1a0] sm:$0xff] %v1253_v44  ;;  %v1257_v1 = vmul.f32 0.003921569, %v963_v56  ;;  %v966_v2 = vcvt.s32.f32 %v672_v57  ;;  %v674_v3 = vand.u32 255, %v1931_v58  ;;  %v675_v4 = vand.u32 255, %v1934_v59 }
  0x44   :  { %1548 = vst [vmem:[#allocation5 + $0x1a8] sm:$0xff] %v1254_v48  ;;  %v1258_v5 = vmul.f32 0.003921569, %v964_v60  ;;  %v1259_v6 = vmul.f32 0.003921569, %v965_v61  ;;  %v967_v7 = vcvt.s32.f32 %v673_v62  ;;  %v676_v8 = vand.u32 255, %v1935_v63 }
  0x45   :  { %1549 = vst [vmem:[#allocation5 + $0x1b0] sm:$0xff] %v1255_v49  ;;  %v1260_v9 = vmul.f32 0.003921569, %v966_v2  ;;  %v968_v10 = vcvt.s32.f32 %v674_v3  ;;  %v969_v11 = vcvt.s32.f32 %v675_v4  ;;  %v1938_v12 = vunpack.c.0.s8 %v2427_v0  ;;  %v2435_v4 = vld [vmem:[#allocation2 + $0xa0] sm:$0xff]  }
  0x46   :  { %1550 = vst [vmem:[#allocation5 + $0x1b8] sm:$0xff] %v1256_v52  ;;  %v1261_v14 = vmul.f32 0.003921569, %v967_v7  ;;  %v970_v15 = vcvt.s32.f32 %v676_v8  ;;  %v1939_v16 = vunpack.c.1.s8 %v2427_v0  ;;  %v1942_v17 = vunpack.c.2.s8 %v2427_v0 }
  0x47   :  { %1551 = vst [vmem:[#allocation5 + $0x1c0] sm:$0xff] %v1257_v1  ;;  %v1262_v18 = vmul.f32 0.003921569, %v968_v10  ;;  %v1263_v19 = vmul.f32 0.003921569, %v969_v11  ;;  %v677_v20 = vand.u32 255, %v1938_v12  ;;  %v1943_v21 = vunpack.c.3.s8 %v2427_v0 }
  0x48   :  { %1552 = vst [vmem:[#allocation5 + $0x1c8] sm:$0xff] %v1258_v5  ;;  %v1264_v22 = vmul.f32 0.003921569, %v970_v15  ;;  %v678_v23 = vand.u32 255, %v1939_v16  ;;  %v679_v24 = vand.u32 255, %v1942_v17  ;;  %v1946_v25 = vunpack.c.0.s8 %v2429_v13  ;;  %v2437_v17 = vld [vmem:[#allocation2 + $0xa8] sm:$0xff]  }
  0x49   :  { %1553 = vst [vmem:[#allocation5 + $0x1d0] sm:$0xff] %v1259_v6  ;;  %v971_v26 = vcvt.s32.f32 %v677_v20  ;;  %v680_v27 = vand.u32 255, %v1943_v21  ;;  %v1947_v28 = vunpack.c.1.s8 %v2429_v13  ;;  %v1950_v29 = vunpack.c.2.s8 %v2429_v13 }
  0x4a   :  { %1554 = vst [vmem:[#allocation5 + $0x1d8] sm:$0xff] %v1260_v9  ;;  %v972_v30 = vcvt.s32.f32 %v678_v23  ;;  %v973_v31 = vcvt.s32.f32 %v679_v24  ;;  %v681_v32 = vand.u32 255, %v1946_v25  ;;  %v1951_v33 = vunpack.c.3.s8 %v2429_v13 }
  0x4b   :  { %1555 = vst [vmem:[#allocation5 + $0x1e0] sm:$0xff] %v1261_v14  ;;  %v1265_v35 = vmul.f32 0.003921569, %v971_v26  ;;  %v974_v36 = vcvt.s32.f32 %v680_v27  ;;  %v682_v37 = vand.u32 255, %v1947_v28  ;;  %v683_v38 = vand.u32 255, %v1950_v29 }
  0x4c   :  { %1556 = vst [vmem:[#allocation5 + $0x1e8] sm:$0xff] %v1262_v18  ;;  %v1266_v39 = vmul.f32 0.003921569, %v972_v30  ;;  %v1267_v40 = vmul.f32 0.003921569, %v973_v31  ;;  %v975_v41 = vcvt.s32.f32 %v681_v32  ;;  %v684_v42 = vand.u32 255, %v1951_v33 }
  0x4d   :  { %1557 = vst [vmem:[#allocation5 + $0x1f0] sm:$0xff] %v1263_v19  ;;  %v1268_v43 = vmul.f32 0.003921569, %v974_v36  ;;  %v976_v44 = vcvt.s32.f32 %v682_v37  ;;  %v977_v45 = vcvt.s32.f32 %v683_v38  ;;  %v1954_v46 = vunpack.c.0.s8 %v2431_v34  ;;  %v2439_v38 = vld [vmem:[#allocation2 + $0xb0] sm:$0xff]  }
  0x4e   :  { %1558 = vst [vmem:[#allocation5 + $0x1f8] sm:$0xff] %v1264_v22  ;;  %v1269_v48 = vmul.f32 0.003921569, %v975_v41  ;;  %v978_v49 = vcvt.s32.f32 %v684_v42  ;;  %v1955_v50 = vunpack.c.1.s8 %v2431_v34  ;;  %v1958_v51 = vunpack.c.2.s8 %v2431_v34 }
  0x4f   :  { %1559 = vst [vmem:[#allocation5 + $0x200] sm:$0xff] %v1265_v35  ;;  %v1270_v52 = vmul.f32 0.003921569, %v976_v44  ;;  %v1271_v53 = vmul.f32 0.003921569, %v977_v45  ;;  %v685_v54 = vand.u32 255, %v1954_v46  ;;  %v1959_v55 = vunpack.c.3.s8 %v2431_v34 }
  0x50   :  { %1560 = vst [vmem:[#allocation5 + $0x208] sm:$0xff] %v1266_v39  ;;  %v1272_v56 = vmul.f32 0.003921569, %v978_v49  ;;  %v686_v57 = vand.u32 255, %v1955_v50  ;;  %v687_v58 = vand.u32 255, %v1958_v51  ;;  %v1962_v59 = vunpack.c.0.s8 %v2433_v47  ;;  %v2441_v51 = vld [vmem:[#allocation2 + $0xb8] sm:$0xff]  }
  0x51   :  { %1561 = vst [vmem:[#allocation5 + $0x210] sm:$0xff] %v1267_v40  ;;  %v979_v60 = vcvt.s32.f32 %v685_v54  ;;  %v688_v61 = vand.u32 255, %v1959_v55  ;;  %v1963_v62 = vunpack.c.1.s8 %v2433_v47  ;;  %v1966_v63 = vunpack.c.2.s8 %v2433_v47 }
  0x52   :  { %1562 = vst [vmem:[#allocation5 + $0x218] sm:$0xff] %v1268_v43  ;;  %v980_v0 = vcvt.s32.f32 %v686_v57  ;;  %v981_v1 = vcvt.s32.f32 %v687_v58  ;;  %v689_v2 = vand.u32 255, %v1962_v59  ;;  %v1967_v3 = vunpack.c.3.s8 %v2433_v47 }
  0x53   :  { %1563 = vst [vmem:[#allocation5 + $0x220] sm:$0xff] %v1269_v48  ;;  %v1273_v5 = vmul.f32 0.003921569, %v979_v60  ;;  %v982_v6 = vcvt.s32.f32 %v688_v61  ;;  %v690_v7 = vand.u32 255, %v1963_v62  ;;  %v691_v8 = vand.u32 255, %v1966_v63 }
  0x54   :  { %1564 = vst [vmem:[#allocation5 + $0x228] sm:$0xff] %v1270_v52  ;;  %v1274_v9 = vmul.f32 0.003921569, %v980_v0  ;;  %v1275_v10 = vmul.f32 0.003921569, %v981_v1  ;;  %v983_v11 = vcvt.s32.f32 %v689_v2  ;;  %v692_v12 = vand.u32 255, %v1967_v3 }
  0x55   :  { %1565 = vst [vmem:[#allocation5 + $0x230] sm:$0xff] %v1271_v53  ;;  %v1276_v13 = vmul.f32 0.003921569, %v982_v6  ;;  %v984_v14 = vcvt.s32.f32 %v690_v7  ;;  %v985_v15 = vcvt.s32.f32 %v691_v8  ;;  %v1970_v16 = vunpack.c.0.s8 %v2435_v4  ;;  %v2443_v8 = vld [vmem:[#allocation2 + $0xc0] sm:$0xff]  }
  0x56   :  { %1566 = vst [vmem:[#allocation5 + $0x238] sm:$0xff] %v1272_v56  ;;  %v1277_v18 = vmul.f32 0.003921569, %v983_v11  ;;  %v986_v19 = vcvt.s32.f32 %v692_v12  ;;  %v1971_v20 = vunpack.c.1.s8 %v2435_v4  ;;  %v1974_v21 = vunpack.c.2.s8 %v2435_v4 }
  0x57   :  { %1567 = vst [vmem:[#allocation5 + $0x240] sm:$0xff] %v1273_v5  ;;  %v1278_v22 = vmul.f32 0.003921569, %v984_v14  ;;  %v1279_v23 = vmul.f32 0.003921569, %v985_v15  ;;  %v693_v24 = vand.u32 255, %v1970_v16  ;;  %v1975_v25 = vunpack.c.3.s8 %v2435_v4 }
  0x58   :  { %1568 = vst [vmem:[#allocation5 + $0x248] sm:$0xff] %v1274_v9  ;;  %v1280_v26 = vmul.f32 0.003921569, %v986_v19  ;;  %v694_v27 = vand.u32 255, %v1971_v20  ;;  %v695_v28 = vand.u32 255, %v1974_v21  ;;  %v1978_v29 = vunpack.c.0.s8 %v2437_v17  ;;  %v2445_v21 = vld [vmem:[#allocation2 + $0xc8] sm:$0xff]  }
  0x59   :  { %1569 = vst [vmem:[#allocation5 + $0x250] sm:$0xff] %v1275_v10  ;;  %v987_v30 = vcvt.s32.f32 %v693_v24  ;;  %v696_v31 = vand.u32 255, %v1975_v25  ;;  %v1979_v32 = vunpack.c.1.s8 %v2437_v17  ;;  %v1982_v33 = vunpack.c.2.s8 %v2437_v17 }
  0x5a   :  { %1570 = vst [vmem:[#allocation5 + $0x258] sm:$0xff] %v1276_v13  ;;  %v988_v34 = vcvt.s32.f32 %v694_v27  ;;  %v989_v35 = vcvt.s32.f32 %v695_v28  ;;  %v697_v36 = vand.u32 255, %v1978_v29  ;;  %v1983_v37 = vunpack.c.3.s8 %v2437_v17 }
  0x5b   :  { %1571 = vst [vmem:[#allocation5 + $0x260] sm:$0xff] %v1277_v18  ;;  %v1281_v39 = vmul.f32 0.003921569, %v987_v30  ;;  %v990_v40 = vcvt.s32.f32 %v696_v31  ;;  %v698_v41 = vand.u32 255, %v1979_v32  ;;  %v699_v42 = vand.u32 255, %v1982_v33 }
  0x5c   :  { %1572 = vst [vmem:[#allocation5 + $0x268] sm:$0xff] %v1278_v22  ;;  %v1282_v43 = vmul.f32 0.003921569, %v988_v34  ;;  %v1283_v44 = vmul.f32 0.003921569, %v989_v35  ;;  %v991_v45 = vcvt.s32.f32 %v697_v36  ;;  %v700_v46 = vand.u32 255, %v1983_v37 }
  0x5d   :  { %1573 = vst [vmem:[#allocation5 + $0x270] sm:$0xff] %v1279_v23  ;;  %v1284_v47 = vmul.f32 0.003921569, %v990_v40  ;;  %v992_v48 = vcvt.s32.f32 %v698_v41  ;;  %v993_v49 = vcvt.s32.f32 %v699_v42  ;;  %v1986_v50 = vunpack.c.0.s8 %v2439_v38  ;;  %v2447_v42 = vld [vmem:[#allocation2 + $0xd0] sm:$0xff]  }
  0x5e   :  { %1574 = vst [vmem:[#allocation5 + $0x278] sm:$0xff] %v1280_v26  ;;  %v1285_v52 = vmul.f32 0.003921569, %v991_v45  ;;  %v994_v53 = vcvt.s32.f32 %v700_v46  ;;  %v1987_v54 = vunpack.c.1.s8 %v2439_v38  ;;  %v1990_v55 = vunpack.c.2.s8 %v2439_v38 }
  0x5f   :  { %1575 = vst [vmem:[#allocation5 + $0x280] sm:$0xff] %v1281_v39  ;;  %v1286_v56 = vmul.f32 0.003921569, %v992_v48  ;;  %v1287_v57 = vmul.f32 0.003921569, %v993_v49  ;;  %v701_v58 = vand.u32 255, %v1986_v50  ;;  %v1991_v59 = vunpack.c.3.s8 %v2439_v38 }
  0x60   :  { %1576 = vst [vmem:[#allocation5 + $0x288] sm:$0xff] %v1282_v43  ;;  %v1288_v60 = vmul.f32 0.003921569, %v994_v53  ;;  %v702_v61 = vand.u32 255, %v1987_v54  ;;  %v703_v62 = vand.u32 255, %v1990_v55  ;;  %v1994_v63 = vunpack.c.0.s8 %v2441_v51  ;;  %v2449_v55 = vld [vmem:[#allocation2 + $0xd8] sm:$0xff]  }
  0x61   :  { %1577 = vst [vmem:[#allocation5 + $0x290] sm:$0xff] %v1283_v44  ;;  %v995_v0 = vcvt.s32.f32 %v701_v58  ;;  %v704_v1 = vand.u32 255, %v1991_v59  ;;  %v1995_v2 = vunpack.c.1.s8 %v2441_v51  ;;  %v1998_v3 = vunpack.c.2.s8 %v2441_v51 }
  0x62   :  { %1578 = vst [vmem:[#allocation5 + $0x298] sm:$0xff] %v1284_v47  ;;  %v996_v4 = vcvt.s32.f32 %v702_v61  ;;  %v997_v5 = vcvt.s32.f32 %v703_v62  ;;  %v705_v6 = vand.u32 255, %v1994_v63  ;;  %v1999_v7 = vunpack.c.3.s8 %v2441_v51 }
  0x63   :  { %1579 = vst [vmem:[#allocation5 + $0x2a0] sm:$0xff] %v1285_v52  ;;  %v1289_v9 = vmul.f32 0.003921569, %v995_v0  ;;  %v998_v10 = vcvt.s32.f32 %v704_v1  ;;  %v706_v11 = vand.u32 255, %v1995_v2  ;;  %v707_v12 = vand.u32 255, %v1998_v3 }
  0x64   :  { %1580 = vst [vmem:[#allocation5 + $0x2a8] sm:$0xff] %v1286_v56  ;;  %v1290_v13 = vmul.f32 0.003921569, %v996_v4  ;;  %v1291_v14 = vmul.f32 0.003921569, %v997_v5  ;;  %v999_v15 = vcvt.s32.f32 %v705_v6  ;;  %v708_v16 = vand.u32 255, %v1999_v7 }
  0x65   :  { %1581 = vst [vmem:[#allocation5 + $0x2b0] sm:$0xff] %v1287_v57  ;;  %v1292_v17 = vmul.f32 0.003921569, %v998_v10  ;;  %v1000_v18 = vcvt.s32.f32 %v706_v11  ;;  %v1001_v19 = vcvt.s32.f32 %v707_v12  ;;  %v2002_v20 = vunpack.c.0.s8 %v2443_v8  ;;  %v2451_v12 = vld [vmem:[#allocation2 + $0xe0] sm:$0xff]  }
  0x66   :  { %1582 = vst [vmem:[#allocation5 + $0x2b8] sm:$0xff] %v1288_v60  ;;  %v1293_v22 = vmul.f32 0.003921569, %v999_v15  ;;  %v1002_v23 = vcvt.s32.f32 %v708_v16  ;;  %v2003_v24 = vunpack.c.1.s8 %v2443_v8  ;;  %v2006_v25 = vunpack.c.2.s8 %v2443_v8 }
  0x67   :  { %1583 = vst [vmem:[#allocation5 + $0x2c0] sm:$0xff] %v1289_v9  ;;  %v1294_v26 = vmul.f32 0.003921569, %v1000_v18  ;;  %v1295_v27 = vmul.f32 0.003921569, %v1001_v19  ;;  %v709_v28 = vand.u32 255, %v2002_v20  ;;  %v2007_v29 = vunpack.c.3.s8 %v2443_v8 }
  0x68   :  { %1584 = vst [vmem:[#allocation5 + $0x2c8] sm:$0xff] %v1290_v13  ;;  %v1296_v30 = vmul.f32 0.003921569, %v1002_v23  ;;  %v710_v31 = vand.u32 255, %v2003_v24  ;;  %v711_v32 = vand.u32 255, %v2006_v25  ;;  %v2010_v33 = vunpack.c.0.s8 %v2445_v21  ;;  %v2453_v25 = vld [vmem:[#allocation2 + $0xe8] sm:$0xff]  }
  0x69   :  { %1585 = vst [vmem:[#allocation5 + $0x2d0] sm:$0xff] %v1291_v14  ;;  %v1003_v34 = vcvt.s32.f32 %v709_v28  ;;  %v712_v35 = vand.u32 255, %v2007_v29  ;;  %v2011_v36 = vunpack.c.1.s8 %v2445_v21  ;;  %v2014_v37 = vunpack.c.2.s8 %v2445_v21 }
  0x6a   :  { %1586 = vst [vmem:[#allocation5 + $0x2d8] sm:$0xff] %v1292_v17  ;;  %v1004_v38 = vcvt.s32.f32 %v710_v31  ;;  %v1005_v39 = vcvt.s32.f32 %v711_v32  ;;  %v713_v40 = vand.u32 255, %v2010_v33  ;;  %v2015_v41 = vunpack.c.3.s8 %v2445_v21 }
  0x6b   :  { %1587 = vst [vmem:[#allocation5 + $0x2e0] sm:$0xff] %v1293_v22  ;;  %v1297_v43 = vmul.f32 0.003921569, %v1003_v34  ;;  %v1006_v44 = vcvt.s32.f32 %v712_v35  ;;  %v714_v45 = vand.u32 255, %v2011_v36  ;;  %v715_v46 = vand.u32 255, %v2014_v37 }
  0x6c   :  { %1588 = vst [vmem:[#allocation5 + $0x2e8] sm:$0xff] %v1294_v26  ;;  %v1298_v47 = vmul.f32 0.003921569, %v1004_v38  ;;  %v1299_v48 = vmul.f32 0.003921569, %v1005_v39  ;;  %v1007_v49 = vcvt.s32.f32 %v713_v40  ;;  %v716_v50 = vand.u32 255, %v2015_v41 }
  0x6d   :  { %1589 = vst [vmem:[#allocation5 + $0x2f0] sm:$0xff] %v1295_v27  ;;  %v1300_v51 = vmul.f32 0.003921569, %v1006_v44  ;;  %v1008_v52 = vcvt.s32.f32 %v714_v45  ;;  %v1009_v53 = vcvt.s32.f32 %v715_v46  ;;  %v2018_v54 = vunpack.c.0.s8 %v2447_v42  ;;  %v2455_v46 = vld [vmem:[#allocation2 + $0xf0] sm:$0xff]  }
  0x6e   :  { %1590 = vst [vmem:[#allocation5 + $0x2f8] sm:$0xff] %v1296_v30  ;;  %v1301_v56 = vmul.f32 0.003921569, %v1007_v49  ;;  %v1010_v57 = vcvt.s32.f32 %v716_v50  ;;  %v2019_v58 = vunpack.c.1.s8 %v2447_v42  ;;  %v2022_v59 = vunpack.c.2.s8 %v2447_v42 }
  0x6f   :  { %1591 = vst [vmem:[#allocation5 + $0x300] sm:$0xff] %v1297_v43  ;;  %v1302_v60 = vmul.f32 0.003921569, %v1008_v52  ;;  %v1303_v61 = vmul.f32 0.003921569, %v1009_v53  ;;  %v717_v62 = vand.u32 255, %v2018_v54  ;;  %v2023_v63 = vunpack.c.3.s8 %v2447_v42 }
  0x70   :  { %1592 = vst [vmem:[#allocation5 + $0x308] sm:$0xff] %v1298_v47  ;;  %v1304_v0 = vmul.f32 0.003921569, %v1010_v57  ;;  %v718_v1 = vand.u32 255, %v2019_v58  ;;  %v719_v2 = vand.u32 255, %v2022_v59  ;;  %v2026_v3 = vunpack.c.0.s8 %v2449_v55  ;;  %v2457_v59 = vld [vmem:[#allocation2 + $0xf8] sm:$0xff]  }
  0x71   :  { %1593 = vst [vmem:[#allocation5 + $0x310] sm:$0xff] %v1299_v48  ;;  %v1011_v4 = vcvt.s32.f32 %v717_v62  ;;  %v720_v5 = vand.u32 255, %v2023_v63  ;;  %v2027_v6 = vunpack.c.1.s8 %v2449_v55  ;;  %v2030_v7 = vunpack.c.2.s8 %v2449_v55 }
  0x72   :  { %1594 = vst [vmem:[#allocation5 + $0x318] sm:$0xff] %v1300_v51  ;;  %v1012_v8 = vcvt.s32.f32 %v718_v1  ;;  %v1013_v9 = vcvt.s32.f32 %v719_v2  ;;  %v721_v10 = vand.u32 255, %v2026_v3  ;;  %v2031_v11 = vunpack.c.3.s8 %v2449_v55 }
  0x73   :  { %1595 = vst [vmem:[#allocation5 + $0x320] sm:$0xff] %v1301_v56  ;;  %v1305_v13 = vmul.f32 0.003921569, %v1011_v4  ;;  %v1014_v14 = vcvt.s32.f32 %v720_v5  ;;  %v722_v15 = vand.u32 255, %v2027_v6  ;;  %v723_v16 = vand.u32 255, %v2030_v7 }
  0x74   :  { %1596 = vst [vmem:[#allocation5 + $0x328] sm:$0xff] %v1302_v60  ;;  %v1306_v17 = vmul.f32 0.003921569, %v1012_v8  ;;  %v1307_v18 = vmul.f32 0.003921569, %v1013_v9  ;;  %v1015_v19 = vcvt.s32.f32 %v721_v10  ;;  %v724_v20 = vand.u32 255, %v2031_v11 }
  0x75   :  { %1597 = vst [vmem:[#allocation5 + $0x330] sm:$0xff] %v1303_v61  ;;  %v1308_v21 = vmul.f32 0.003921569, %v1014_v14  ;;  %v1016_v22 = vcvt.s32.f32 %v722_v15  ;;  %v1017_v23 = vcvt.s32.f32 %v723_v16  ;;  %v2034_v24 = vunpack.c.0.s8 %v2451_v12  ;;  %v2459_v16 = vld [vmem:[#allocation2 + $0x100] sm:$0xff]  }
  0x76   :  { %1598 = vst [vmem:[#allocation5 + $0x338] sm:$0xff] %v1304_v0  ;;  %v1309_v26 = vmul.f32 0.003921569, %v1015_v19  ;;  %v1018_v27 = vcvt.s32.f32 %v724_v20  ;;  %v2035_v28 = vunpack.c.1.s8 %v2451_v12  ;;  %v2038_v29 = vunpack.c.2.s8 %v2451_v12 }
  0x77   :  { %1599 = vst [vmem:[#allocation5 + $0x340] sm:$0xff] %v1305_v13  ;;  %v1310_v30 = vmul.f32 0.003921569, %v1016_v22  ;;  %v1311_v31 = vmul.f32 0.003921569, %v1017_v23  ;;  %v725_v32 = vand.u32 255, %v2034_v24  ;;  %v2039_v33 = vunpack.c.3.s8 %v2451_v12 }
  0x78   :  { %1600 = vst [vmem:[#allocation5 + $0x348] sm:$0xff] %v1306_v17  ;;  %v1312_v34 = vmul.f32 0.003921569, %v1018_v27  ;;  %v726_v35 = vand.u32 255, %v2035_v28  ;;  %v727_v36 = vand.u32 255, %v2038_v29  ;;  %v2042_v37 = vunpack.c.0.s8 %v2453_v25  ;;  %v2461_v29 = vld [vmem:[#allocation2 + $0x108] sm:$0xff]  }
  0x79   :  { %1601 = vst [vmem:[#allocation5 + $0x350] sm:$0xff] %v1307_v18  ;;  %v1019_v38 = vcvt.s32.f32 %v725_v32  ;;  %v728_v39 = vand.u32 255, %v2039_v33  ;;  %v2043_v40 = vunpack.c.1.s8 %v2453_v25  ;;  %v2046_v41 = vunpack.c.2.s8 %v2453_v25 }
  0x7a   :  { %1602 = vst [vmem:[#allocation5 + $0x358] sm:$0xff] %v1308_v21  ;;  %v1020_v42 = vcvt.s32.f32 %v726_v35  ;;  %v1021_v43 = vcvt.s32.f32 %v727_v36  ;;  %v729_v44 = vand.u32 255, %v2042_v37  ;;  %v2047_v45 = vunpack.c.3.s8 %v2453_v25 }
  0x7b   :  { %1603 = vst [vmem:[#allocation5 + $0x360] sm:$0xff] %v1309_v26  ;;  %v1313_v47 = vmul.f32 0.003921569, %v1019_v38  ;;  %v1022_v48 = vcvt.s32.f32 %v728_v39  ;;  %v730_v49 = vand.u32 255, %v2043_v40  ;;  %v731_v50 = vand.u32 255, %v2046_v41 }
  0x7c   :  { %1604 = vst [vmem:[#allocation5 + $0x368] sm:$0xff] %v1310_v30  ;;  %v1314_v51 = vmul.f32 0.003921569, %v1020_v42  ;;  %v1315_v52 = vmul.f32 0.003921569, %v1021_v43  ;;  %v1023_v53 = vcvt.s32.f32 %v729_v44  ;;  %v732_v54 = vand.u32 255, %v2047_v45 }
  0x7d   :  { %1605 = vst [vmem:[#allocation5 + $0x370] sm:$0xff] %v1311_v31  ;;  %v1316_v55 = vmul.f32 0.003921569, %v1022_v48  ;;  %v1024_v56 = vcvt.s32.f32 %v730_v49  ;;  %v1025_v57 = vcvt.s32.f32 %v731_v50  ;;  %v2050_v58 = vunpack.c.0.s8 %v2455_v46  ;;  %v2463_v50 = vld [vmem:[#allocation2 + $0x110] sm:$0xff]  }
  0x7e   :  { %1606 = vst [vmem:[#allocation5 + $0x378] sm:$0xff] %v1312_v34  ;;  %v1317_v60 = vmul.f32 0.003921569, %v1023_v53  ;;  %v1026_v61 = vcvt.s32.f32 %v732_v54  ;;  %v2051_v62 = vunpack.c.1.s8 %v2455_v46  ;;  %v2054_v63 = vunpack.c.2.s8 %v2455_v46 }
  0x7f   :  { %1607 = vst [vmem:[#allocation5 + $0x380] sm:$0xff] %v1313_v47  ;;  %v1318_v0 = vmul.f32 0.003921569, %v1024_v56  ;;  %v1319_v1 = vmul.f32 0.003921569, %v1025_v57  ;;  %v733_v2 = vand.u32 255, %v2050_v58  ;;  %v2055_v3 = vunpack.c.3.s8 %v2455_v46 }
  0x80   :  { %1608 = vst [vmem:[#allocation5 + $0x388] sm:$0xff] %v1314_v51  ;;  %v1320_v4 = vmul.f32 0.003921569, %v1026_v61  ;;  %v734_v5 = vand.u32 255, %v2051_v62  ;;  %v735_v6 = vand.u32 255, %v2054_v63  ;;  %v2058_v7 = vunpack.c.0.s8 %v2457_v59  ;;  %v2465_v63 = vld [vmem:[#allocation2 + $0x118] sm:$0xff]  }
  0x81   :  { %1609 = vst [vmem:[#allocation5 + $0x390] sm:$0xff] %v1315_v52  ;;  %v1027_v8 = vcvt.s32.f32 %v733_v2  ;;  %v736_v9 = vand.u32 255, %v2055_v3  ;;  %v2059_v10 = vunpack.c.1.s8 %v2457_v59  ;;  %v2062_v11 = vunpack.c.2.s8 %v2457_v59 }
  0x82   :  { %1610 = vst [vmem:[#allocation5 + $0x398] sm:$0xff] %v1316_v55  ;;  %v1028_v12 = vcvt.s32.f32 %v734_v5  ;;  %v1029_v13 = vcvt.s32.f32 %v735_v6  ;;  %v737_v14 = vand.u32 255, %v2058_v7  ;;  %v2063_v15 = vunpack.c.3.s8 %v2457_v59 }
  0x83   :  { %1611 = vst [vmem:[#allocation5 + $0x3a0] sm:$0xff] %v1317_v60  ;;  %v1321_v17 = vmul.f32 0.003921569, %v1027_v8  ;;  %v1030_v18 = vcvt.s32.f32 %v736_v9  ;;  %v738_v19 = vand.u32 255, %v2059_v10  ;;  %v739_v20 = vand.u32 255, %v2062_v11 }
  0x84   :  { %1612 = vst [vmem:[#allocation5 + $0x3a8] sm:$0xff] %v1318_v0  ;;  %v1322_v21 = vmul.f32 0.003921569, %v1028_v12  ;;  %v1323_v22 = vmul.f32 0.003921569, %v1029_v13  ;;  %v1031_v23 = vcvt.s32.f32 %v737_v14  ;;  %v740_v24 = vand.u32 255, %v2063_v15 }
  0x85   :  { %1613 = vst [vmem:[#allocation5 + $0x3b0] sm:$0xff] %v1319_v1  ;;  %v1324_v25 = vmul.f32 0.003921569, %v1030_v18  ;;  %v1032_v26 = vcvt.s32.f32 %v738_v19  ;;  %v1033_v27 = vcvt.s32.f32 %v739_v20  ;;  %v2066_v28 = vunpack.c.0.s8 %v2459_v16  ;;  %v2467_v20 = vld [vmem:[#allocation2 + $0x120] sm:$0xff]  }
  0x86   :  { %1614 = vst [vmem:[#allocation5 + $0x3b8] sm:$0xff] %v1320_v4  ;;  %v1325_v30 = vmul.f32 0.003921569, %v1031_v23  ;;  %v1034_v31 = vcvt.s32.f32 %v740_v24  ;;  %v2067_v32 = vunpack.c.1.s8 %v2459_v16  ;;  %v2070_v33 = vunpack.c.2.s8 %v2459_v16 }
  0x87   :  { %1615 = vst [vmem:[#allocation5 + $0x3c0] sm:$0xff] %v1321_v17  ;;  %v1326_v34 = vmul.f32 0.003921569, %v1032_v26  ;;  %v1327_v35 = vmul.f32 0.003921569, %v1033_v27  ;;  %v741_v36 = vand.u32 255, %v2066_v28  ;;  %v2071_v37 = vunpack.c.3.s8 %v2459_v16 }
  0x88   :  { %1616 = vst [vmem:[#allocation5 + $0x3c8] sm:$0xff] %v1322_v21  ;;  %v1328_v38 = vmul.f32 0.003921569, %v1034_v31  ;;  %v742_v39 = vand.u32 255, %v2067_v32  ;;  %v743_v40 = vand.u32 255, %v2070_v33  ;;  %v2074_v41 = vunpack.c.0.s8 %v2461_v29  ;;  %v2469_v33 = vld [vmem:[#allocation2 + $0x128] sm:$0xff]  }
  0x89   :  { %1617 = vst [vmem:[#allocation5 + $0x3d0] sm:$0xff] %v1323_v22  ;;  %v1035_v42 = vcvt.s32.f32 %v741_v36  ;;  %v744_v43 = vand.u32 255, %v2071_v37  ;;  %v2075_v44 = vunpack.c.1.s8 %v2461_v29  ;;  %v2078_v45 = vunpack.c.2.s8 %v2461_v29 }
  0x8a   :  { %1618 = vst [vmem:[#allocation5 + $0x3d8] sm:$0xff] %v1324_v25  ;;  %v1036_v46 = vcvt.s32.f32 %v742_v39  ;;  %v1037_v47 = vcvt.s32.f32 %v743_v40  ;;  %v745_v48 = vand.u32 255, %v2074_v41  ;;  %v2079_v49 = vunpack.c.3.s8 %v2461_v29 }
  0x8b   :  { %1619 = vst [vmem:[#allocation5 + $0x3e0] sm:$0xff] %v1325_v30  ;;  %v1329_v51 = vmul.f32 0.003921569, %v1035_v42  ;;  %v1038_v52 = vcvt.s32.f32 %v744_v43  ;;  %v746_v53 = vand.u32 255, %v2075_v44  ;;  %v747_v54 = vand.u32 255, %v2078_v45 }
  0x8c   :  { %1620 = vst [vmem:[#allocation5 + $0x3e8] sm:$0xff] %v1326_v34  ;;  %v1330_v55 = vmul.f32 0.003921569, %v1036_v46  ;;  %v1331_v56 = vmul.f32 0.003921569, %v1037_v47  ;;  %v1039_v57 = vcvt.s32.f32 %v745_v48  ;;  %v748_v58 = vand.u32 255, %v2079_v49 }
  0x8d   :  { %1621 = vst [vmem:[#allocation5 + $0x3f0] sm:$0xff] %v1327_v35  ;;  %v1332_v59 = vmul.f32 0.003921569, %v1038_v52  ;;  %v1040_v60 = vcvt.s32.f32 %v746_v53  ;;  %v1041_v61 = vcvt.s32.f32 %v747_v54  ;;  %v2082_v62 = vunpack.c.0.s8 %v2463_v50  ;;  %v2471_v54 = vld [vmem:[#allocation2 + $0x130] sm:$0xff]  }
  0x8e   :  { %1622 = vst [vmem:[#allocation5 + $0x3f8] sm:$0xff] %v1328_v38  ;;  %v1333_v0 = vmul.f32 0.003921569, %v1039_v57  ;;  %v1042_v1 = vcvt.s32.f32 %v748_v58  ;;  %v2083_v2 = vunpack.c.1.s8 %v2463_v50  ;;  %v2086_v3 = vunpack.c.2.s8 %v2463_v50 }
  0x8f   :  { %1623 = vst [vmem:[#allocation5 + $0x400] sm:$0xff] %v1329_v51  ;;  %v1334_v4 = vmul.f32 0.003921569, %v1040_v60  ;;  %v1335_v5 = vmul.f32 0.003921569, %v1041_v61  ;;  %v749_v6 = vand.u32 255, %v2082_v62  ;;  %v2087_v7 = vunpack.c.3.s8 %v2463_v50 }
  0x90   :  { %1624 = vst [vmem:[#allocation5 + $0x408] sm:$0xff] %v1330_v55  ;;  %v1336_v8 = vmul.f32 0.003921569, %v1042_v1  ;;  %v750_v9 = vand.u32 255, %v2083_v2  ;;  %v751_v10 = vand.u32 255, %v2086_v3  ;;  %v2090_v11 = vunpack.c.0.s8 %v2465_v63  ;;  %v2473_v3 = vld [vmem:[#allocation2 + $0x138] sm:$0xff]  }
  0x91   :  { %1625 = vst [vmem:[#allocation5 + $0x410] sm:$0xff] %v1331_v56  ;;  %v1043_v12 = vcvt.s32.f32 %v749_v6  ;;  %v752_v13 = vand.u32 255, %v2087_v7  ;;  %v2091_v14 = vunpack.c.1.s8 %v2465_v63  ;;  %v2094_v15 = vunpack.c.2.s8 %v2465_v63 }
  0x92   :  { %1626 = vst [vmem:[#allocation5 + $0x418] sm:$0xff] %v1332_v59  ;;  %v1044_v16 = vcvt.s32.f32 %v750_v9  ;;  %v1045_v17 = vcvt.s32.f32 %v751_v10  ;;  %v753_v18 = vand.u32 255, %v2090_v11  ;;  %v2095_v19 = vunpack.c.3.s8 %v2465_v63 }
  0x93   :  { %1627 = vst [vmem:[#allocation5 + $0x420] sm:$0xff] %v1333_v0  ;;  %v1337_v21 = vmul.f32 0.003921569, %v1043_v12  ;;  %v1046_v22 = vcvt.s32.f32 %v752_v13  ;;  %v754_v23 = vand.u32 255, %v2091_v14  ;;  %v755_v24 = vand.u32 255, %v2094_v15 }
  0x94   :  { %1628 = vst [vmem:[#allocation5 + $0x428] sm:$0xff] %v1334_v4  ;;  %v1338_v25 = vmul.f32 0.003921569, %v1044_v16  ;;  %v1339_v26 = vmul.f32 0.003921569, %v1045_v17  ;;  %v1047_v27 = vcvt.s32.f32 %v753_v18  ;;  %v756_v28 = vand.u32 255, %v2095_v19 }
  0x95   :  { %1629 = vst [vmem:[#allocation5 + $0x430] sm:$0xff] %v1335_v5  ;;  %v1340_v29 = vmul.f32 0.003921569, %v1046_v22  ;;  %v1048_v30 = vcvt.s32.f32 %v754_v23  ;;  %v1049_v31 = vcvt.s32.f32 %v755_v24  ;;  %v2098_v32 = vunpack.c.0.s8 %v2467_v20  ;;  %v2475_v24 = vld [vmem:[#allocation2 + $0x140] sm:$0xff]  }
  0x96   :  { %1630 = vst [vmem:[#allocation5 + $0x438] sm:$0xff] %v1336_v8  ;;  %v1341_v34 = vmul.f32 0.003921569, %v1047_v27  ;;  %v1050_v35 = vcvt.s32.f32 %v756_v28  ;;  %v2099_v36 = vunpack.c.1.s8 %v2467_v20  ;;  %v2102_v37 = vunpack.c.2.s8 %v2467_v20 }
  0x97   :  { %1631 = vst [vmem:[#allocation5 + $0x440] sm:$0xff] %v1337_v21  ;;  %v1342_v38 = vmul.f32 0.003921569, %v1048_v30  ;;  %v1343_v39 = vmul.f32 0.003921569, %v1049_v31  ;;  %v757_v40 = vand.u32 255, %v2098_v32  ;;  %v2103_v41 = vunpack.c.3.s8 %v2467_v20 }
  0x98   :  { %1632 = vst [vmem:[#allocation5 + $0x448] sm:$0xff] %v1338_v25  ;;  %v1344_v42 = vmul.f32 0.003921569, %v1050_v35  ;;  %v758_v43 = vand.u32 255, %v2099_v36  ;;  %v759_v44 = vand.u32 255, %v2102_v37  ;;  %v2106_v45 = vunpack.c.0.s8 %v2469_v33  ;;  %v2477_v37 = vld [vmem:[#allocation2 + $0x148] sm:$0xff]  }
  0x99   :  { %1633 = vst [vmem:[#allocation5 + $0x450] sm:$0xff] %v1339_v26  ;;  %v1051_v46 = vcvt.s32.f32 %v757_v40  ;;  %v760_v47 = vand.u32 255, %v2103_v41  ;;  %v2107_v48 = vunpack.c.1.s8 %v2469_v33  ;;  %v2110_v49 = vunpack.c.2.s8 %v2469_v33 }
  0x9a   :  { %1634 = vst [vmem:[#allocation5 + $0x458] sm:$0xff] %v1340_v29  ;;  %v1052_v50 = vcvt.s32.f32 %v758_v43  ;;  %v1053_v51 = vcvt.s32.f32 %v759_v44  ;;  %v761_v52 = vand.u32 255, %v2106_v45  ;;  %v2111_v53 = vunpack.c.3.s8 %v2469_v33 }
  0x9b   :  { %1635 = vst [vmem:[#allocation5 + $0x460] sm:$0xff] %v1341_v34  ;;  %v1345_v55 = vmul.f32 0.003921569, %v1051_v46  ;;  %v1054_v56 = vcvt.s32.f32 %v760_v47  ;;  %v762_v57 = vand.u32 255, %v2107_v48  ;;  %v763_v58 = vand.u32 255, %v2110_v49 }
  0x9c   :  { %1636 = vst [vmem:[#allocation5 + $0x468] sm:$0xff] %v1342_v38  ;;  %v1346_v59 = vmul.f32 0.003921569, %v1052_v50  ;;  %v1347_v60 = vmul.f32 0.003921569, %v1053_v51  ;;  %v1055_v61 = vcvt.s32.f32 %v761_v52  ;;  %v764_v62 = vand.u32 255, %v2111_v53 }
  0x9d   :  { %1637 = vst [vmem:[#allocation5 + $0x470] sm:$0xff] %v1343_v39  ;;  %v1348_v63 = vmul.f32 0.003921569, %v1054_v56  ;;  %v1056_v0 = vcvt.s32.f32 %v762_v57  ;;  %v1057_v1 = vcvt.s32.f32 %v763_v58  ;;  %v2114_v2 = vunpack.c.0.s8 %v2471_v54  ;;  %v2479_v58 = vld [vmem:[#allocation2 + $0x150] sm:$0xff]  }
  0x9e   :  { %1638 = vst [vmem:[#allocation5 + $0x478] sm:$0xff] %v1344_v42  ;;  %v1349_v4 = vmul.f32 0.003921569, %v1055_v61  ;;  %v1058_v5 = vcvt.s32.f32 %v764_v62  ;;  %v2115_v6 = vunpack.c.1.s8 %v2471_v54  ;;  %v2118_v7 = vunpack.c.2.s8 %v2471_v54 }
  0x9f   :  { %1639 = vst [vmem:[#allocation5 + $0x480] sm:$0xff] %v1345_v55  ;;  %v1350_v8 = vmul.f32 0.003921569, %v1056_v0  ;;  %v1351_v9 = vmul.f32 0.003921569, %v1057_v1  ;;  %v765_v10 = vand.u32 255, %v2114_v2  ;;  %v2119_v11 = vunpack.c.3.s8 %v2471_v54 }
  0xa0   :  { %1640 = vst [vmem:[#allocation5 + $0x488] sm:$0xff] %v1346_v59  ;;  %v1352_v12 = vmul.f32 0.003921569, %v1058_v5  ;;  %v766_v13 = vand.u32 255, %v2115_v6  ;;  %v767_v14 = vand.u32 255, %v2118_v7  ;;  %v2122_v15 = vunpack.c.0.s8 %v2473_v3  ;;  %v2481_v7 = vld [vmem:[#allocation2 + $0x158] sm:$0xff]  }
  0xa1   :  { %1641 = vst [vmem:[#allocation5 + $0x490] sm:$0xff] %v1347_v60  ;;  %v1059_v16 = vcvt.s32.f32 %v765_v10  ;;  %v768_v17 = vand.u32 255, %v2119_v11  ;;  %v2123_v18 = vunpack.c.1.s8 %v2473_v3  ;;  %v2126_v19 = vunpack.c.2.s8 %v2473_v3 }
  0xa2   :  { %1642 = vst [vmem:[#allocation5 + $0x498] sm:$0xff] %v1348_v63  ;;  %v1060_v20 = vcvt.s32.f32 %v766_v13  ;;  %v1061_v21 = vcvt.s32.f32 %v767_v14  ;;  %v769_v22 = vand.u32 255, %v2122_v15  ;;  %v2127_v23 = vunpack.c.3.s8 %v2473_v3 }
  0xa3   :  { %1643 = vst [vmem:[#allocation5 + $0x4a0] sm:$0xff] %v1349_v4  ;;  %v1353_v25 = vmul.f32 0.003921569, %v1059_v16  ;;  %v1062_v26 = vcvt.s32.f32 %v768_v17  ;;  %v770_v27 = vand.u32 255, %v2123_v18  ;;  %v771_v28 = vand.u32 255, %v2126_v19 }
  0xa4   :  { %1644 = vst [vmem:[#allocation5 + $0x4a8] sm:$0xff] %v1350_v8  ;;  %v1354_v29 = vmul.f32 0.003921569, %v1060_v20  ;;  %v1355_v30 = vmul.f32 0.003921569, %v1061_v21  ;;  %v1063_v31 = vcvt.s32.f32 %v769_v22  ;;  %v772_v32 = vand.u32 255, %v2127_v23 }
  0xa5   :  { %1645 = vst [vmem:[#allocation5 + $0x4b0] sm:$0xff] %v1351_v9  ;;  %v1356_v33 = vmul.f32 0.003921569, %v1062_v26  ;;  %v1064_v34 = vcvt.s32.f32 %v770_v27  ;;  %v1065_v35 = vcvt.s32.f32 %v771_v28  ;;  %v2130_v36 = vunpack.c.0.s8 %v2475_v24  ;;  %v2483_v28 = vld [vmem:[#allocation2 + $0x160] sm:$0xff]  }
  0xa6   :  { %1646 = vst [vmem:[#allocation5 + $0x4b8] sm:$0xff] %v1352_v12  ;;  %v1357_v38 = vmul.f32 0.003921569, %v1063_v31  ;;  %v1066_v39 = vcvt.s32.f32 %v772_v32  ;;  %v2131_v40 = vunpack.c.1.s8 %v2475_v24  ;;  %v2134_v41 = vunpack.c.2.s8 %v2475_v24 }
  0xa7   :  { %1647 = vst [vmem:[#allocation5 + $0x4c0] sm:$0xff] %v1353_v25  ;;  %v1358_v42 = vmul.f32 0.003921569, %v1064_v34  ;;  %v1359_v43 = vmul.f32 0.003921569, %v1065_v35  ;;  %v773_v44 = vand.u32 255, %v2130_v36  ;;  %v2135_v45 = vunpack.c.3.s8 %v2475_v24 }
  0xa8   :  { %1648 = vst [vmem:[#allocation5 + $0x4c8] sm:$0xff] %v1354_v29  ;;  %v1360_v46 = vmul.f32 0.003921569, %v1066_v39  ;;  %v774_v47 = vand.u32 255, %v2131_v40  ;;  %v775_v48 = vand.u32 255, %v2134_v41  ;;  %v2138_v49 = vunpack.c.0.s8 %v2477_v37  ;;  %v2485_v41 = vld [vmem:[#allocation2 + $0x168] sm:$0xff]  }
  0xa9   :  { %1649 = vst [vmem:[#allocation5 + $0x4d0] sm:$0xff] %v1355_v30  ;;  %v1067_v50 = vcvt.s32.f32 %v773_v44  ;;  %v776_v51 = vand.u32 255, %v2135_v45  ;;  %v2139_v52 = vunpack.c.1.s8 %v2477_v37  ;;  %v2142_v53 = vunpack.c.2.s8 %v2477_v37 }
  0xaa   :  { %1650 = vst [vmem:[#allocation5 + $0x4d8] sm:$0xff] %v1356_v33  ;;  %v1068_v54 = vcvt.s32.f32 %v774_v47  ;;  %v1069_v55 = vcvt.s32.f32 %v775_v48  ;;  %v777_v56 = vand.u32 255, %v2138_v49  ;;  %v2143_v57 = vunpack.c.3.s8 %v2477_v37 }
  0xab   :  { %1651 = vst [vmem:[#allocation5 + $0x4e0] sm:$0xff] %v1357_v38  ;;  %v1361_v59 = vmul.f32 0.003921569, %v1067_v50  ;;  %v1070_v60 = vcvt.s32.f32 %v776_v51  ;;  %v778_v61 = vand.u32 255, %v2139_v52  ;;  %v779_v62 = vand.u32 255, %v2142_v53 }
  0xac   :  { %1652 = vst [vmem:[#allocation5 + $0x4e8] sm:$0xff] %v1358_v42  ;;  %v1362_v63 = vmul.f32 0.003921569, %v1068_v54  ;;  %v1363_v0 = vmul.f32 0.003921569, %v1069_v55  ;;  %v1071_v1 = vcvt.s32.f32 %v777_v56  ;;  %v780_v2 = vand.u32 255, %v2143_v57 }
  0xad   :  { %1653 = vst [vmem:[#allocation5 + $0x4f0] sm:$0xff] %v1359_v43  ;;  %v1364_v3 = vmul.f32 0.003921569, %v1070_v60  ;;  %v1072_v4 = vcvt.s32.f32 %v778_v61  ;;  %v1073_v5 = vcvt.s32.f32 %v779_v62  ;;  %v2146_v6 = vunpack.c.0.s8 %v2479_v58  ;;  %v2487_v62 = vld [vmem:[#allocation2 + $0x170] sm:$0xff]  }
  0xae   :  { %1654 = vst [vmem:[#allocation5 + $0x4f8] sm:$0xff] %v1360_v46  ;;  %v1365_v8 = vmul.f32 0.003921569, %v1071_v1  ;;  %v1074_v9 = vcvt.s32.f32 %v780_v2  ;;  %v2147_v10 = vunpack.c.1.s8 %v2479_v58  ;;  %v2150_v11 = vunpack.c.2.s8 %v2479_v58 }
  0xaf   :  { %1655 = vst [vmem:[#allocation5 + $0x500] sm:$0xff] %v1361_v59  ;;  %v1366_v12 = vmul.f32 0.003921569, %v1072_v4  ;;  %v1367_v13 = vmul.f32 0.003921569, %v1073_v5  ;;  %v781_v14 = vand.u32 255, %v2146_v6  ;;  %v2151_v15 = vunpack.c.3.s8 %v2479_v58 }
  0xb0   :  { %1656 = vst [vmem:[#allocation5 + $0x508] sm:$0xff] %v1362_v63  ;;  %v1368_v16 = vmul.f32 0.003921569, %v1074_v9  ;;  %v782_v17 = vand.u32 255, %v2147_v10  ;;  %v783_v18 = vand.u32 255, %v2150_v11  ;;  %v2154_v19 = vunpack.c.0.s8 %v2481_v7  ;;  %v2489_v11 = vld [vmem:[#allocation2 + $0x178] sm:$0xff]  }
  0xb1   :  { %1657 = vst [vmem:[#allocation5 + $0x510] sm:$0xff] %v1363_v0  ;;  %v1075_v20 = vcvt.s32.f32 %v781_v14  ;;  %v784_v21 = vand.u32 255, %v2151_v15  ;;  %v2155_v22 = vunpack.c.1.s8 %v2481_v7  ;;  %v2158_v23 = vunpack.c.2.s8 %v2481_v7 }
  0xb2   :  { %1658 = vst [vmem:[#allocation5 + $0x518] sm:$0xff] %v1364_v3  ;;  %v1076_v24 = vcvt.s32.f32 %v782_v17  ;;  %v1077_v25 = vcvt.s32.f32 %v783_v18  ;;  %v785_v26 = vand.u32 255, %v2154_v19  ;;  %v2159_v27 = vunpack.c.3.s8 %v2481_v7 }
  0xb3   :  { %1659 = vst [vmem:[#allocation5 + $0x520] sm:$0xff] %v1365_v8  ;;  %v1369_v29 = vmul.f32 0.003921569, %v1075_v20  ;;  %v1078_v30 = vcvt.s32.f32 %v784_v21  ;;  %v786_v31 = vand.u32 255, %v2155_v22  ;;  %v787_v32 = vand.u32 255, %v2158_v23 }
  0xb4   :  { %1660 = vst [vmem:[#allocation5 + $0x528] sm:$0xff] %v1366_v12  ;;  %v1370_v33 = vmul.f32 0.003921569, %v1076_v24  ;;  %v1371_v34 = vmul.f32 0.003921569, %v1077_v25  ;;  %v1079_v35 = vcvt.s32.f32 %v785_v26  ;;  %v788_v36 = vand.u32 255, %v2159_v27 }
  0xb5   :  { %1661 = vst [vmem:[#allocation5 + $0x530] sm:$0xff] %v1367_v13  ;;  %v1372_v37 = vmul.f32 0.003921569, %v1078_v30  ;;  %v1080_v38 = vcvt.s32.f32 %v786_v31  ;;  %v1081_v39 = vcvt.s32.f32 %v787_v32  ;;  %v2162_v40 = vunpack.c.0.s8 %v2483_v28  ;;  %v2491_v32 = vld [vmem:[#allocation2 + $0x180] sm:$0xff]  }
  0xb6   :  { %1662 = vst [vmem:[#allocation5 + $0x538] sm:$0xff] %v1368_v16  ;;  %v1373_v42 = vmul.f32 0.003921569, %v1079_v35  ;;  %v1082_v43 = vcvt.s32.f32 %v788_v36  ;;  %v2163_v44 = vunpack.c.1.s8 %v2483_v28  ;;  %v2166_v45 = vunpack.c.2.s8 %v2483_v28 }
  0xb7   :  { %1663 = vst [vmem:[#allocation5 + $0x540] sm:$0xff] %v1369_v29  ;;  %v1374_v46 = vmul.f32 0.003921569, %v1080_v38  ;;  %v1375_v47 = vmul.f32 0.003921569, %v1081_v39  ;;  %v789_v48 = vand.u32 255, %v2162_v40  ;;  %v2167_v49 = vunpack.c.3.s8 %v2483_v28 }
  0xb8   :  { %1664 = vst [vmem:[#allocation5 + $0x548] sm:$0xff] %v1370_v33  ;;  %v1376_v50 = vmul.f32 0.003921569, %v1082_v43  ;;  %v790_v51 = vand.u32 255, %v2163_v44  ;;  %v791_v52 = vand.u32 255, %v2166_v45  ;;  %v2170_v53 = vunpack.c.0.s8 %v2485_v41  ;;  %v2493_v45 = vld [vmem:[#allocation2 + $0x188] sm:$0xff]  }
  0xb9   :  { %1665 = vst [vmem:[#allocation5 + $0x550] sm:$0xff] %v1371_v34  ;;  %v1083_v54 = vcvt.s32.f32 %v789_v48  ;;  %v792_v55 = vand.u32 255, %v2167_v49  ;;  %v2171_v56 = vunpack.c.1.s8 %v2485_v41  ;;  %v2174_v57 = vunpack.c.2.s8 %v2485_v41 }
  0xba   :  { %1666 = vst [vmem:[#allocation5 + $0x558] sm:$0xff] %v1372_v37  ;;  %v1084_v58 = vcvt.s32.f32 %v790_v51  ;;  %v1085_v59 = vcvt.s32.f32 %v791_v52  ;;  %v793_v60 = vand.u32 255, %v2170_v53  ;;  %v2175_v61 = vunpack.c.3.s8 %v2485_v41 }
  0xbb   :  { %1667 = vst [vmem:[#allocation5 + $0x560] sm:$0xff] %v1373_v42  ;;  %v1377_v63 = vmul.f32 0.003921569, %v1083_v54  ;;  %v1086_v0 = vcvt.s32.f32 %v792_v55  ;;  %v794_v1 = vand.u32 255, %v2171_v56  ;;  %v795_v2 = vand.u32 255, %v2174_v57 }
  0xbc   :  { %1668 = vst [vmem:[#allocation5 + $0x568] sm:$0xff] %v1374_v46  ;;  %v1378_v3 = vmul.f32 0.003921569, %v1084_v58  ;;  %v1379_v4 = vmul.f32 0.003921569, %v1085_v59  ;;  %v1087_v5 = vcvt.s32.f32 %v793_v60  ;;  %v796_v6 = vand.u32 255, %v2175_v61 }
  0xbd   :  { %1669 = vst [vmem:[#allocation5 + $0x570] sm:$0xff] %v1375_v47  ;;  %v1380_v7 = vmul.f32 0.003921569, %v1086_v0  ;;  %v1088_v8 = vcvt.s32.f32 %v794_v1  ;;  %v1089_v9 = vcvt.s32.f32 %v795_v2  ;;  %v2178_v10 = vunpack.c.0.s8 %v2487_v62  ;;  %v2495_v2 = vld [vmem:[#allocation2 + $0x190] sm:$0xff]  }
  0xbe   :  { %1670 = vst [vmem:[#allocation5 + $0x578] sm:$0xff] %v1376_v50  ;;  %v1381_v12 = vmul.f32 0.003921569, %v1087_v5  ;;  %v1090_v13 = vcvt.s32.f32 %v796_v6  ;;  %v2179_v14 = vunpack.c.1.s8 %v2487_v62  ;;  %v2182_v15 = vunpack.c.2.s8 %v2487_v62 }
  0xbf   :  { %1671 = vst [vmem:[#allocation5 + $0x580] sm:$0xff] %v1377_v63  ;;  %v1382_v16 = vmul.f32 0.003921569, %v1088_v8  ;;  %v1383_v17 = vmul.f32 0.003921569, %v1089_v9  ;;  %v797_v18 = vand.u32 255, %v2178_v10  ;;  %v2183_v19 = vunpack.c.3.s8 %v2487_v62 }
  0xc0   :  { %1672 = vst [vmem:[#allocation5 + $0x588] sm:$0xff] %v1378_v3  ;;  %v1384_v20 = vmul.f32 0.003921569, %v1090_v13  ;;  %v798_v21 = vand.u32 255, %v2179_v14  ;;  %v799_v22 = vand.u32 255, %v2182_v15  ;;  %v2186_v23 = vunpack.c.0.s8 %v2489_v11  ;;  %v2497_v15 = vld [vmem:[#allocation2 + $0x198] sm:$0xff]  }
  0xc1   :  { %1673 = vst [vmem:[#allocation5 + $0x590] sm:$0xff] %v1379_v4  ;;  %v1091_v24 = vcvt.s32.f32 %v797_v18  ;;  %v800_v25 = vand.u32 255, %v2183_v19  ;;  %v2187_v26 = vunpack.c.1.s8 %v2489_v11  ;;  %v2190_v27 = vunpack.c.2.s8 %v2489_v11 }
  0xc2   :  { %1674 = vst [vmem:[#allocation5 + $0x598] sm:$0xff] %v1380_v7  ;;  %v1092_v28 = vcvt.s32.f32 %v798_v21  ;;  %v1093_v29 = vcvt.s32.f32 %v799_v22  ;;  %v801_v30 = vand.u32 255, %v2186_v23  ;;  %v2191_v31 = vunpack.c.3.s8 %v2489_v11 }
  0xc3   :  { %1675 = vst [vmem:[#allocation5 + $0x5a0] sm:$0xff] %v1381_v12  ;;  %v1385_v33 = vmul.f32 0.003921569, %v1091_v24  ;;  %v1094_v34 = vcvt.s32.f32 %v800_v25  ;;  %v802_v35 = vand.u32 255, %v2187_v26  ;;  %v803_v36 = vand.u32 255, %v2190_v27 }
  0xc4   :  { %1676 = vst [vmem:[#allocation5 + $0x5a8] sm:$0xff] %v1382_v16  ;;  %v1386_v37 = vmul.f32 0.003921569, %v1092_v28  ;;  %v1387_v38 = vmul.f32 0.003921569, %v1093_v29  ;;  %v1095_v39 = vcvt.s32.f32 %v801_v30  ;;  %v804_v40 = vand.u32 255, %v2191_v31 }
  0xc5   :  { %1677 = vst [vmem:[#allocation5 + $0x5b0] sm:$0xff] %v1383_v17  ;;  %v1388_v41 = vmul.f32 0.003921569, %v1094_v34  ;;  %v1096_v42 = vcvt.s32.f32 %v802_v35  ;;  %v1097_v43 = vcvt.s32.f32 %v803_v36  ;;  %v2194_v44 = vunpack.c.0.s8 %v2491_v32  ;;  %v2499_v36 = vld [vmem:[#allocation2 + $0x1a0] sm:$0xff]  }
  0xc6   :  { %1678 = vst [vmem:[#allocation5 + $0x5b8] sm:$0xff] %v1384_v20  ;;  %v1389_v46 = vmul.f32 0.003921569, %v1095_v39  ;;  %v1098_v47 = vcvt.s32.f32 %v804_v40  ;;  %v2195_v48 = vunpack.c.1.s8 %v2491_v32  ;;  %v2198_v49 = vunpack.c.2.s8 %v2491_v32 }
  0xc7   :  { %1679 = vst [vmem:[#allocation5 + $0x5c0] sm:$0xff] %v1385_v33  ;;  %v1390_v50 = vmul.f32 0.003921569, %v1096_v42  ;;  %v1391_v51 = vmul.f32 0.003921569, %v1097_v43  ;;  %v805_v52 = vand.u32 255, %v2194_v44  ;;  %v2199_v53 = vunpack.c.3.s8 %v2491_v32 }
  0xc8   :  { %1680 = vst [vmem:[#allocation5 + $0x5c8] sm:$0xff] %v1386_v37  ;;  %v1392_v54 = vmul.f32 0.003921569, %v1098_v47  ;;  %v806_v55 = vand.u32 255, %v2195_v48  ;;  %v807_v56 = vand.u32 255, %v2198_v49  ;;  %v2202_v57 = vunpack.c.0.s8 %v2493_v45  ;;  %v2501_v49 = vld [vmem:[#allocation2 + $0x1a8] sm:$0xff]  }
  0xc9   :  { %1681 = vst [vmem:[#allocation5 + $0x5d0] sm:$0xff] %v1387_v38  ;;  %v1099_v58 = vcvt.s32.f32 %v805_v52  ;;  %v808_v59 = vand.u32 255, %v2199_v53  ;;  %v2203_v60 = vunpack.c.1.s8 %v2493_v45  ;;  %v2206_v61 = vunpack.c.2.s8 %v2493_v45 }
  0xca   :  { %1682 = vst [vmem:[#allocation5 + $0x5d8] sm:$0xff] %v1388_v41  ;;  %v1100_v62 = vcvt.s32.f32 %v806_v55  ;;  %v1101_v63 = vcvt.s32.f32 %v807_v56  ;;  %v809_v0 = vand.u32 255, %v2202_v57  ;;  %v2207_v1 = vunpack.c.3.s8 %v2493_v45 }
  0xcb   :  { %1683 = vst [vmem:[#allocation5 + $0x5e0] sm:$0xff] %v1389_v46  ;;  %v1393_v3 = vmul.f32 0.003921569, %v1099_v58  ;;  %v1102_v4 = vcvt.s32.f32 %v808_v59  ;;  %v810_v5 = vand.u32 255, %v2203_v60  ;;  %v811_v6 = vand.u32 255, %v2206_v61 }
  0xcc   :  { %1684 = vst [vmem:[#allocation5 + $0x5e8] sm:$0xff] %v1390_v50  ;;  %v1394_v7 = vmul.f32 0.003921569, %v1100_v62  ;;  %v1395_v8 = vmul.f32 0.003921569, %v1101_v63  ;;  %v1103_v9 = vcvt.s32.f32 %v809_v0  ;;  %v812_v10 = vand.u32 255, %v2207_v1 }
  0xcd   :  { %1685 = vst [vmem:[#allocation5 + $0x5f0] sm:$0xff] %v1391_v51  ;;  %v1396_v11 = vmul.f32 0.003921569, %v1102_v4  ;;  %v1104_v12 = vcvt.s32.f32 %v810_v5  ;;  %v1105_v13 = vcvt.s32.f32 %v811_v6  ;;  %v2210_v14 = vunpack.c.0.s8 %v2495_v2  ;;  %v2503_v6 = vld [vmem:[#allocation2 + $0x1b0] sm:$0xff]  }
  0xce   :  { %1686 = vst [vmem:[#allocation5 + $0x5f8] sm:$0xff] %v1392_v54  ;;  %v1397_v16 = vmul.f32 0.003921569, %v1103_v9  ;;  %v1106_v17 = vcvt.s32.f32 %v812_v10  ;;  %v2211_v18 = vunpack.c.1.s8 %v2495_v2  ;;  %v2214_v19 = vunpack.c.2.s8 %v2495_v2 }
  0xcf   :  { %1687 = vst [vmem:[#allocation5 + $0x600] sm:$0xff] %v1393_v3  ;;  %v1398_v20 = vmul.f32 0.003921569, %v1104_v12  ;;  %v1399_v21 = vmul.f32 0.003921569, %v1105_v13  ;;  %v813_v22 = vand.u32 255, %v2210_v14  ;;  %v2215_v23 = vunpack.c.3.s8 %v2495_v2 }
  0xd0   :  { %1688 = vst [vmem:[#allocation5 + $0x608] sm:$0xff] %v1394_v7  ;;  %v1400_v24 = vmul.f32 0.003921569, %v1106_v17  ;;  %v814_v25 = vand.u32 255, %v2211_v18  ;;  %v815_v26 = vand.u32 255, %v2214_v19  ;;  %v2218_v27 = vunpack.c.0.s8 %v2497_v15  ;;  %v2505_v19 = vld [vmem:[#allocation2 + $0x1b8] sm:$0xff]  }
  0xd1   :  { %1689 = vst [vmem:[#allocation5 + $0x610] sm:$0xff] %v1395_v8  ;;  %v1107_v28 = vcvt.s32.f32 %v813_v22  ;;  %v816_v29 = vand.u32 255, %v2215_v23  ;;  %v2219_v30 = vunpack.c.1.s8 %v2497_v15  ;;  %v2222_v31 = vunpack.c.2.s8 %v2497_v15 }
  0xd2   :  { %1690 = vst [vmem:[#allocation5 + $0x618] sm:$0xff] %v1396_v11  ;;  %v1108_v32 = vcvt.s32.f32 %v814_v25  ;;  %v1109_v33 = vcvt.s32.f32 %v815_v26  ;;  %v817_v34 = vand.u32 255, %v2218_v27  ;;  %v2223_v35 = vunpack.c.3.s8 %v2497_v15 }
  0xd3   :  { %1691 = vst [vmem:[#allocation5 + $0x620] sm:$0xff] %v1397_v16  ;;  %v1401_v37 = vmul.f32 0.003921569, %v1107_v28  ;;  %v1110_v38 = vcvt.s32.f32 %v816_v29  ;;  %v818_v39 = vand.u32 255, %v2219_v30  ;;  %v819_v40 = vand.u32 255, %v2222_v31 }
  0xd4   :  { %1692 = vst [vmem:[#allocation5 + $0x628] sm:$0xff] %v1398_v20  ;;  %v1402_v41 = vmul.f32 0.003921569, %v1108_v32  ;;  %v1403_v42 = vmul.f32 0.003921569, %v1109_v33  ;;  %v1111_v43 = vcvt.s32.f32 %v817_v34  ;;  %v820_v44 = vand.u32 255, %v2223_v35 }
  0xd5   :  { %1693 = vst [vmem:[#allocation5 + $0x630] sm:$0xff] %v1399_v21  ;;  %v1404_v45 = vmul.f32 0.003921569, %v1110_v38  ;;  %v1112_v46 = vcvt.s32.f32 %v818_v39  ;;  %v1113_v47 = vcvt.s32.f32 %v819_v40  ;;  %v2226_v48 = vunpack.c.0.s8 %v2499_v36  ;;  %v2507_v40 = vld [vmem:[#allocation2 + $0x1c0] sm:$0xff]  }
  0xd6   :  { %1694 = vst [vmem:[#allocation5 + $0x638] sm:$0xff] %v1400_v24  ;;  %v1405_v50 = vmul.f32 0.003921569, %v1111_v43  ;;  %v1114_v51 = vcvt.s32.f32 %v820_v44  ;;  %v2227_v52 = vunpack.c.1.s8 %v2499_v36  ;;  %v2230_v53 = vunpack.c.2.s8 %v2499_v36 }
  0xd7   :  { %1695 = vst [vmem:[#allocation5 + $0x640] sm:$0xff] %v1401_v37  ;;  %v1406_v54 = vmul.f32 0.003921569, %v1112_v46  ;;  %v1407_v55 = vmul.f32 0.003921569, %v1113_v47  ;;  %v821_v56 = vand.u32 255, %v2226_v48  ;;  %v2231_v57 = vunpack.c.3.s8 %v2499_v36 }
  0xd8   :  { %1696 = vst [vmem:[#allocation5 + $0x648] sm:$0xff] %v1402_v41  ;;  %v1408_v58 = vmul.f32 0.003921569, %v1114_v51  ;;  %v822_v59 = vand.u32 255, %v2227_v52  ;;  %v823_v60 = vand.u32 255, %v2230_v53  ;;  %v2234_v61 = vunpack.c.0.s8 %v2501_v49  ;;  %v2509_v53 = vld [vmem:[#allocation2 + $0x1c8] sm:$0xff]  }
  0xd9   :  { %1697 = vst [vmem:[#allocation5 + $0x650] sm:$0xff] %v1403_v42  ;;  %v1115_v62 = vcvt.s32.f32 %v821_v56  ;;  %v824_v63 = vand.u32 255, %v2231_v57  ;;  %v2235_v0 = vunpack.c.1.s8 %v2501_v49  ;;  %v2238_v1 = vunpack.c.2.s8 %v2501_v49 }
  0xda   :  { %1698 = vst [vmem:[#allocation5 + $0x658] sm:$0xff] %v1404_v45  ;;  %v1116_v2 = vcvt.s32.f32 %v822_v59  ;;  %v1117_v3 = vcvt.s32.f32 %v823_v60  ;;  %v825_v4 = vand.u32 255, %v2234_v61  ;;  %v2239_v5 = vunpack.c.3.s8 %v2501_v49 }
  0xdb   :  { %1699 = vst [vmem:[#allocation5 + $0x660] sm:$0xff] %v1405_v50  ;;  %v1409_v7 = vmul.f32 0.003921569, %v1115_v62  ;;  %v1118_v8 = vcvt.s32.f32 %v824_v63  ;;  %v826_v9 = vand.u32 255, %v2235_v0  ;;  %v827_v10 = vand.u32 255, %v2238_v1 }
  0xdc   :  { %1700 = vst [vmem:[#allocation5 + $0x668] sm:$0xff] %v1406_v54  ;;  %v1410_v11 = vmul.f32 0.003921569, %v1116_v2  ;;  %v1411_v12 = vmul.f32 0.003921569, %v1117_v3  ;;  %v1119_v13 = vcvt.s32.f32 %v825_v4  ;;  %v828_v14 = vand.u32 255, %v2239_v5 }
  0xdd   :  { %1701 = vst [vmem:[#allocation5 + $0x670] sm:$0xff] %v1407_v55  ;;  %v1412_v15 = vmul.f32 0.003921569, %v1118_v8  ;;  %v1120_v16 = vcvt.s32.f32 %v826_v9  ;;  %v1121_v17 = vcvt.s32.f32 %v827_v10  ;;  %v2242_v18 = vunpack.c.0.s8 %v2503_v6  ;;  %v2511_v10 = vld [vmem:[#allocation2 + $0x1d0] sm:$0xff]  }
  0xde   :  { %1702 = vst [vmem:[#allocation5 + $0x678] sm:$0xff] %v1408_v58  ;;  %v1413_v20 = vmul.f32 0.003921569, %v1119_v13  ;;  %v1122_v21 = vcvt.s32.f32 %v828_v14  ;;  %v2243_v22 = vunpack.c.1.s8 %v2503_v6  ;;  %v2246_v23 = vunpack.c.2.s8 %v2503_v6 }
  0xdf   :  { %1703 = vst [vmem:[#allocation5 + $0x680] sm:$0xff] %v1409_v7  ;;  %v1414_v24 = vmul.f32 0.003921569, %v1120_v16  ;;  %v1415_v25 = vmul.f32 0.003921569, %v1121_v17  ;;  %v829_v26 = vand.u32 255, %v2242_v18  ;;  %v2247_v27 = vunpack.c.3.s8 %v2503_v6 }
  0xe0   :  { %1704 = vst [vmem:[#allocation5 + $0x688] sm:$0xff] %v1410_v11  ;;  %v1416_v28 = vmul.f32 0.003921569, %v1122_v21  ;;  %v830_v29 = vand.u32 255, %v2243_v22  ;;  %v831_v30 = vand.u32 255, %v2246_v23  ;;  %v2250_v31 = vunpack.c.0.s8 %v2505_v19  ;;  %v2513_v23 = vld [vmem:[#allocation2 + $0x1d8] sm:$0xff]  }
  0xe1   :  { %1705 = vst [vmem:[#allocation5 + $0x690] sm:$0xff] %v1411_v12  ;;  %v1123_v32 = vcvt.s32.f32 %v829_v26  ;;  %v832_v33 = vand.u32 255, %v2247_v27  ;;  %v2251_v34 = vunpack.c.1.s8 %v2505_v19  ;;  %v2254_v35 = vunpack.c.2.s8 %v2505_v19 }
  0xe2   :  { %1706 = vst [vmem:[#allocation5 + $0x698] sm:$0xff] %v1412_v15  ;;  %v1124_v36 = vcvt.s32.f32 %v830_v29  ;;  %v1125_v37 = vcvt.s32.f32 %v831_v30  ;;  %v833_v38 = vand.u32 255, %v2250_v31  ;;  %v2255_v39 = vunpack.c.3.s8 %v2505_v19 }
  0xe3   :  { %1707 = vst [vmem:[#allocation5 + $0x6a0] sm:$0xff] %v1413_v20  ;;  %v1417_v41 = vmul.f32 0.003921569, %v1123_v32  ;;  %v1126_v42 = vcvt.s32.f32 %v832_v33  ;;  %v834_v43 = vand.u32 255, %v2251_v34  ;;  %v835_v44 = vand.u32 255, %v2254_v35 }
  0xe4   :  { %1708 = vst [vmem:[#allocation5 + $0x6a8] sm:$0xff] %v1414_v24  ;;  %v1418_v45 = vmul.f32 0.003921569, %v1124_v36  ;;  %v1419_v46 = vmul.f32 0.003921569, %v1125_v37  ;;  %v1127_v47 = vcvt.s32.f32 %v833_v38  ;;  %v836_v48 = vand.u32 255, %v2255_v39 }
  0xe5   :  { %1709 = vst [vmem:[#allocation5 + $0x6b0] sm:$0xff] %v1415_v25  ;;  %v1420_v49 = vmul.f32 0.003921569, %v1126_v42  ;;  %v1128_v50 = vcvt.s32.f32 %v834_v43  ;;  %v1129_v51 = vcvt.s32.f32 %v835_v44  ;;  %v2258_v52 = vunpack.c.0.s8 %v2507_v40  ;;  %v2515_v44 = vld [vmem:[#allocation2 + $0x1e0] sm:$0xff]  }
  0xe6   :  { %1710 = vst [vmem:[#allocation5 + $0x6b8] sm:$0xff] %v1416_v28  ;;  %v1421_v54 = vmul.f32 0.003921569, %v1127_v47  ;;  %v1130_v55 = vcvt.s32.f32 %v836_v48  ;;  %v2259_v56 = vunpack.c.1.s8 %v2507_v40  ;;  %v2262_v57 = vunpack.c.2.s8 %v2507_v40 }
  0xe7   :  { %1711 = vst [vmem:[#allocation5 + $0x6c0] sm:$0xff] %v1417_v41  ;;  %v1422_v58 = vmul.f32 0.003921569, %v1128_v50  ;;  %v1423_v59 = vmul.f32 0.003921569, %v1129_v51  ;;  %v837_v60 = vand.u32 255, %v2258_v52  ;;  %v2263_v61 = vunpack.c.3.s8 %v2507_v40 }
  0xe8   :  { %1712 = vst [vmem:[#allocation5 + $0x6c8] sm:$0xff] %v1418_v45  ;;  %v1424_v62 = vmul.f32 0.003921569, %v1130_v55  ;;  %v838_v63 = vand.u32 255, %v2259_v56  ;;  %v839_v0 = vand.u32 255, %v2262_v57  ;;  %v2266_v1 = vunpack.c.0.s8 %v2509_v53  ;;  %v2517_v57 = vld [vmem:[#allocation2 + $0x1e8] sm:$0xff]  }
  0xe9   :  { %1713 = vst [vmem:[#allocation5 + $0x6d0] sm:$0xff] %v1419_v46  ;;  %v1131_v2 = vcvt.s32.f32 %v837_v60  ;;  %v840_v3 = vand.u32 255, %v2263_v61  ;;  %v2267_v4 = vunpack.c.1.s8 %v2509_v53  ;;  %v2270_v5 = vunpack.c.2.s8 %v2509_v53 }
  0xea   :  { %1714 = vst [vmem:[#allocation5 + $0x6d8] sm:$0xff] %v1420_v49  ;;  %v1132_v6 = vcvt.s32.f32 %v838_v63  ;;  %v1133_v7 = vcvt.s32.f32 %v839_v0  ;;  %v841_v8 = vand.u32 255, %v2266_v1  ;;  %v2271_v9 = vunpack.c.3.s8 %v2509_v53 }
  0xeb   :  { %1715 = vst [vmem:[#allocation5 + $0x6e0] sm:$0xff] %v1421_v54  ;;  %v1425_v11 = vmul.f32 0.003921569, %v1131_v2  ;;  %v1134_v12 = vcvt.s32.f32 %v840_v3  ;;  %v842_v13 = vand.u32 255, %v2267_v4  ;;  %v843_v14 = vand.u32 255, %v2270_v5 }
  0xec   :  { %1716 = vst [vmem:[#allocation5 + $0x6e8] sm:$0xff] %v1422_v58  ;;  %v1426_v15 = vmul.f32 0.003921569, %v1132_v6  ;;  %v1427_v16 = vmul.f32 0.003921569, %v1133_v7  ;;  %v1135_v17 = vcvt.s32.f32 %v841_v8  ;;  %v844_v18 = vand.u32 255, %v2271_v9 }
  0xed   :  { %1717 = vst [vmem:[#allocation5 + $0x6f0] sm:$0xff] %v1423_v59  ;;  %v1428_v19 = vmul.f32 0.003921569, %v1134_v12  ;;  %v1136_v20 = vcvt.s32.f32 %v842_v13  ;;  %v1137_v21 = vcvt.s32.f32 %v843_v14  ;;  %v2274_v22 = vunpack.c.0.s8 %v2511_v10  ;;  %v2519_v14 = vld [vmem:[#allocation2 + $0x1f0] sm:$0xff]  }
  0xee   :  { %1718 = vst [vmem:[#allocation5 + $0x6f8] sm:$0xff] %v1424_v62  ;;  %v1429_v24 = vmul.f32 0.003921569, %v1135_v17  ;;  %v1138_v25 = vcvt.s32.f32 %v844_v18  ;;  %v2275_v26 = vunpack.c.1.s8 %v2511_v10  ;;  %v2278_v27 = vunpack.c.2.s8 %v2511_v10 }
  0xef   :  { %1719 = vst [vmem:[#allocation5 + $0x700] sm:$0xff] %v1425_v11  ;;  %v1430_v28 = vmul.f32 0.003921569, %v1136_v20  ;;  %v1431_v29 = vmul.f32 0.003921569, %v1137_v21  ;;  %v845_v30 = vand.u32 255, %v2274_v22  ;;  %v2279_v31 = vunpack.c.3.s8 %v2511_v10 }
  0xf0   :  { %1720 = vst [vmem:[#allocation5 + $0x708] sm:$0xff] %v1426_v15  ;;  %v1432_v32 = vmul.f32 0.003921569, %v1138_v25  ;;  %v846_v33 = vand.u32 255, %v2275_v26  ;;  %v847_v34 = vand.u32 255, %v2278_v27  ;;  %v2282_v35 = vunpack.c.0.s8 %v2513_v23  ;;  %v2521_v27 = vld [vmem:[#allocation2 + $0x1f8] sm:$0xff]  }
  0xf1   :  { %1721 = vst [vmem:[#allocation5 + $0x710] sm:$0xff] %v1427_v16  ;;  %v1139_v36 = vcvt.s32.f32 %v845_v30  ;;  %v848_v37 = vand.u32 255, %v2279_v31  ;;  %v2283_v38 = vunpack.c.1.s8 %v2513_v23  ;;  %v2286_v39 = vunpack.c.2.s8 %v2513_v23 }
  0xf2   :  { %1722 = vst [vmem:[#allocation5 + $0x718] sm:$0xff] %v1428_v19  ;;  %v1140_v40 = vcvt.s32.f32 %v846_v33  ;;  %v1141_v41 = vcvt.s32.f32 %v847_v34  ;;  %v849_v42 = vand.u32 255, %v2282_v35  ;;  %v2287_v43 = vunpack.c.3.s8 %v2513_v23 }
  0xf3   :  { %1723 = vst [vmem:[#allocation5 + $0x720] sm:$0xff] %v1429_v24  ;;  %v1433_v45 = vmul.f32 0.003921569, %v1139_v36  ;;  %v1142_v46 = vcvt.s32.f32 %v848_v37  ;;  %v850_v47 = vand.u32 255, %v2283_v38  ;;  %v851_v48 = vand.u32 255, %v2286_v39 }
  0xf4   :  { %1724 = vst [vmem:[#allocation5 + $0x728] sm:$0xff] %v1430_v28  ;;  %v1434_v49 = vmul.f32 0.003921569, %v1140_v40  ;;  %v1435_v50 = vmul.f32 0.003921569, %v1141_v41  ;;  %v1143_v51 = vcvt.s32.f32 %v849_v42  ;;  %v852_v52 = vand.u32 255, %v2287_v43 }
  0xf5   :  { %1725 = vst [vmem:[#allocation5 + $0x730] sm:$0xff] %v1431_v29  ;;  %v1436_v53 = vmul.f32 0.003921569, %v1142_v46  ;;  %v1144_v54 = vcvt.s32.f32 %v850_v47  ;;  %v1145_v55 = vcvt.s32.f32 %v851_v48  ;;  %v2290_v56 = vunpack.c.0.s8 %v2515_v44  ;;  %v2523_v48 = vld [vmem:[#allocation2 + $0x200] sm:$0xff]  }
  0xf6   :  { %1726 = vst [vmem:[#allocation5 + $0x738] sm:$0xff] %v1432_v32  ;;  %v1437_v58 = vmul.f32 0.003921569, %v1143_v51  ;;  %v1146_v59 = vcvt.s32.f32 %v852_v52  ;;  %v2291_v60 = vunpack.c.1.s8 %v2515_v44  ;;  %v2294_v61 = vunpack.c.2.s8 %v2515_v44 }
  0xf7   :  { %1727 = vst [vmem:[#allocation5 + $0x740] sm:$0xff] %v1433_v45  ;;  %v1438_v62 = vmul.f32 0.003921569, %v1144_v54  ;;  %v1439_v63 = vmul.f32 0.003921569, %v1145_v55  ;;  %v853_v0 = vand.u32 255, %v2290_v56  ;;  %v2295_v1 = vunpack.c.3.s8 %v2515_v44 }
  0xf8   :  { %1728 = vst [vmem:[#allocation5 + $0x748] sm:$0xff] %v1434_v49  ;;  %v1440_v2 = vmul.f32 0.003921569, %v1146_v59  ;;  %v854_v3 = vand.u32 255, %v2291_v60  ;;  %v855_v4 = vand.u32 255, %v2294_v61  ;;  %v2298_v5 = vunpack.c.0.s8 %v2517_v57  ;;  %v2525_v61 = vld [vmem:[#allocation2 + $0x208] sm:$0xff]  }
  0xf9   :  { %1729 = vst [vmem:[#allocation5 + $0x750] sm:$0xff] %v1435_v50  ;;  %v1147_v6 = vcvt.s32.f32 %v853_v0  ;;  %v856_v7 = vand.u32 255, %v2295_v1  ;;  %v2299_v8 = vunpack.c.1.s8 %v2517_v57  ;;  %v2302_v9 = vunpack.c.2.s8 %v2517_v57 }
  0xfa   :  { %1730 = vst [vmem:[#allocation5 + $0x758] sm:$0xff] %v1436_v53  ;;  %v1148_v10 = vcvt.s32.f32 %v854_v3  ;;  %v1149_v11 = vcvt.s32.f32 %v855_v4  ;;  %v857_v12 = vand.u32 255, %v2298_v5  ;;  %v2303_v13 = vunpack.c.3.s8 %v2517_v57 }
  0xfb   :  { %1731 = vst [vmem:[#allocation5 + $0x760] sm:$0xff] %v1437_v58  ;;  %v1441_v15 = vmul.f32 0.003921569, %v1147_v6  ;;  %v1150_v16 = vcvt.s32.f32 %v856_v7  ;;  %v858_v17 = vand.u32 255, %v2299_v8  ;;  %v859_v18 = vand.u32 255, %v2302_v9 }
  0xfc   :  { %1732 = vst [vmem:[#allocation5 + $0x768] sm:$0xff] %v1438_v62  ;;  %v1442_v19 = vmul.f32 0.003921569, %v1148_v10  ;;  %v1443_v20 = vmul.f32 0.003921569, %v1149_v11  ;;  %v1151_v21 = vcvt.s32.f32 %v857_v12  ;;  %v860_v22 = vand.u32 255, %v2303_v13 }
  0xfd   :  { %1733 = vst [vmem:[#allocation5 + $0x770] sm:$0xff] %v1439_v63  ;;  %v1444_v23 = vmul.f32 0.003921569, %v1150_v16  ;;  %v1152_v24 = vcvt.s32.f32 %v858_v17  ;;  %v1153_v25 = vcvt.s32.f32 %v859_v18  ;;  %v2306_v26 = vunpack.c.0.s8 %v2519_v14  ;;  %v2527_v18 = vld [vmem:[#allocation2 + $0x210] sm:$0xff]  }
  0xfe   :  { %1734 = vst [vmem:[#allocation5 + $0x778] sm:$0xff] %v1440_v2  ;;  %v1445_v28 = vmul.f32 0.003921569, %v1151_v21  ;;  %v1154_v29 = vcvt.s32.f32 %v860_v22  ;;  %v2307_v30 = vunpack.c.1.s8 %v2519_v14  ;;  %v2310_v31 = vunpack.c.2.s8 %v2519_v14 }
  0xff   :  { %1735 = vst [vmem:[#allocation5 + $0x780] sm:$0xff] %v1441_v15  ;;  %v1446_v32 = vmul.f32 0.003921569, %v1152_v24  ;;  %v1447_v33 = vmul.f32 0.003921569, %v1153_v25  ;;  %v861_v34 = vand.u32 255, %v2306_v26  ;;  %v2311_v35 = vunpack.c.3.s8 %v2519_v14 }
 0x100   :  { %1736 = vst [vmem:[#allocation5 + $0x788] sm:$0xff] %v1442_v19  ;;  %v1448_v36 = vmul.f32 0.003921569, %v1154_v29  ;;  %v862_v37 = vand.u32 255, %v2307_v30  ;;  %v863_v38 = vand.u32 255, %v2310_v31  ;;  %v2314_v39 = vunpack.c.0.s8 %v2521_v27  ;;  %v2529_v31 = vld [vmem:[#allocation2 + $0x218] sm:$0xff]  }
 0x101   :  { %1737 = vst [vmem:[#allocation5 + $0x790] sm:$0xff] %v1443_v20  ;;  %v1155_v40 = vcvt.s32.f32 %v861_v34  ;;  %v864_v41 = vand.u32 255, %v2311_v35  ;;  %v2315_v42 = vunpack.c.1.s8 %v2521_v27  ;;  %v2318_v43 = vunpack.c.2.s8 %v2521_v27 }
 0x102   :  { %1738 = vst [vmem:[#allocation5 + $0x798] sm:$0xff] %v1444_v23  ;;  %v1156_v44 = vcvt.s32.f32 %v862_v37  ;;  %v1157_v45 = vcvt.s32.f32 %v863_v38  ;;  %v865_v46 = vand.u32 255, %v2314_v39  ;;  %v2319_v47 = vunpack.c.3.s8 %v2521_v27 }
 0x103   :  { %1739 = vst [vmem:[#allocation5 + $0x7a0] sm:$0xff] %v1445_v28  ;;  %v1449_v49 = vmul.f32 0.003921569, %v1155_v40  ;;  %v1158_v50 = vcvt.s32.f32 %v864_v41  ;;  %v866_v51 = vand.u32 255, %v2315_v42  ;;  %v867_v52 = vand.u32 255, %v2318_v43 }
 0x104   :  { %1740 = vst [vmem:[#allocation5 + $0x7a8] sm:$0xff] %v1446_v32  ;;  %v1450_v53 = vmul.f32 0.003921569, %v1156_v44  ;;  %v1451_v54 = vmul.f32 0.003921569, %v1157_v45  ;;  %v1159_v55 = vcvt.s32.f32 %v865_v46  ;;  %v868_v56 = vand.u32 255, %v2319_v47 }
 0x105   :  { %1741 = vst [vmem:[#allocation5 + $0x7b0] sm:$0xff] %v1447_v33  ;;  %v1452_v57 = vmul.f32 0.003921569, %v1158_v50  ;;  %v1160_v58 = vcvt.s32.f32 %v866_v51  ;;  %v1161_v59 = vcvt.s32.f32 %v867_v52  ;;  %v2322_v60 = vunpack.c.0.s8 %v2523_v48  ;;  %v2531_v52 = vld [vmem:[#allocation2 + $0x220] sm:$0xff]  }
 0x106   :  { %1742 = vst [vmem:[#allocation5 + $0x7b8] sm:$0xff] %v1448_v36  ;;  %v1453_v62 = vmul.f32 0.003921569, %v1159_v55  ;;  %v1162_v63 = vcvt.s32.f32 %v868_v56  ;;  %v2323_v0 = vunpack.c.1.s8 %v2523_v48  ;;  %v2326_v1 = vunpack.c.2.s8 %v2523_v48 }
 0x107   :  { %1743 = vst [vmem:[#allocation5 + $0x7c0] sm:$0xff] %v1449_v49  ;;  %v1454_v2 = vmul.f32 0.003921569, %v1160_v58  ;;  %v1455_v3 = vmul.f32 0.003921569, %v1161_v59  ;;  %v869_v4 = vand.u32 255, %v2322_v60  ;;  %v2327_v5 = vunpack.c.3.s8 %v2523_v48 }
 0x108   :  { %1744 = vst [vmem:[#allocation5 + $0x7c8] sm:$0xff] %v1450_v53  ;;  %v1456_v6 = vmul.f32 0.003921569, %v1162_v63  ;;  %v870_v7 = vand.u32 255, %v2323_v0  ;;  %v871_v8 = vand.u32 255, %v2326_v1  ;;  %v2330_v9 = vunpack.c.0.s8 %v2525_v61  ;;  %v2533_v1 = vld [vmem:[#allocation2 + $0x228] sm:$0xff]  }
 0x109   :  { %1745 = vst [vmem:[#allocation5 + $0x7d0] sm:$0xff] %v1451_v54  ;;  %v1163_v10 = vcvt.s32.f32 %v869_v4  ;;  %v872_v11 = vand.u32 255, %v2327_v5  ;;  %v2331_v12 = vunpack.c.1.s8 %v2525_v61  ;;  %v2334_v13 = vunpack.c.2.s8 %v2525_v61 }
 0x10a   :  { %1746 = vst [vmem:[#allocation5 + $0x7d8] sm:$0xff] %v1452_v57  ;;  %v1164_v14 = vcvt.s32.f32 %v870_v7  ;;  %v1165_v15 = vcvt.s32.f32 %v871_v8  ;;  %v873_v16 = vand.u32 255, %v2330_v9  ;;  %v2335_v17 = vunpack.c.3.s8 %v2525_v61 }
 0x10b   :  { %1747 = vst [vmem:[#allocation5 + $0x7e0] sm:$0xff] %v1453_v62  ;;  %v1457_v19 = vmul.f32 0.003921569, %v1163_v10  ;;  %v1166_v20 = vcvt.s32.f32 %v872_v11  ;;  %v874_v21 = vand.u32 255, %v2331_v12  ;;  %v875_v22 = vand.u32 255, %v2334_v13 }
 0x10c   :  { %1748 = vst [vmem:[#allocation5 + $0x7e8] sm:$0xff] %v1454_v2  ;;  %v1458_v23 = vmul.f32 0.003921569, %v1164_v14  ;;  %v1459_v24 = vmul.f32 0.003921569, %v1165_v15  ;;  %v1167_v25 = vcvt.s32.f32 %v873_v16  ;;  %v876_v26 = vand.u32 255, %v2335_v17 }
 0x10d   :  { %1749 = vst [vmem:[#allocation5 + $0x7f0] sm:$0xff] %v1455_v3  ;;  %v1460_v27 = vmul.f32 0.003921569, %v1166_v20  ;;  %v1168_v28 = vcvt.s32.f32 %v874_v21  ;;  %v1169_v29 = vcvt.s32.f32 %v875_v22  ;;  %v2338_v30 = vunpack.c.0.s8 %v2527_v18  ;;  %v2535_v22 = vld [vmem:[#allocation2 + $0x230] sm:$0xff]  }
 0x10e   :  { %1750 = vst [vmem:[#allocation5 + $0x7f8] sm:$0xff] %v1456_v6  ;;  %v1461_v32 = vmul.f32 0.003921569, %v1167_v25  ;;  %v1170_v33 = vcvt.s32.f32 %v876_v26  ;;  %v2339_v34 = vunpack.c.1.s8 %v2527_v18  ;;  %v2342_v35 = vunpack.c.2.s8 %v2527_v18 }
 0x10f   :  { %1751 = vst [vmem:[#allocation5 + $0x800] sm:$0xff] %v1457_v19  ;;  %v1462_v36 = vmul.f32 0.003921569, %v1168_v28  ;;  %v1463_v37 = vmul.f32 0.003921569, %v1169_v29  ;;  %v877_v38 = vand.u32 255, %v2338_v30  ;;  %v2343_v39 = vunpack.c.3.s8 %v2527_v18 }
 0x110   :  { %1752 = vst [vmem:[#allocation5 + $0x808] sm:$0xff] %v1458_v23  ;;  %v1464_v40 = vmul.f32 0.003921569, %v1170_v33  ;;  %v878_v41 = vand.u32 255, %v2339_v34  ;;  %v879_v42 = vand.u32 255, %v2342_v35  ;;  %v2346_v43 = vunpack.c.0.s8 %v2529_v31  ;;  %v2537_v35 = vld [vmem:[#allocation2 + $0x238] sm:$0xff]  }
 0x111   :  { %1753 = vst [vmem:[#allocation5 + $0x810] sm:$0xff] %v1459_v24  ;;  %v1171_v44 = vcvt.s32.f32 %v877_v38  ;;  %v880_v45 = vand.u32 255, %v2343_v39  ;;  %v2347_v46 = vunpack.c.1.s8 %v2529_v31  ;;  %v2350_v47 = vunpack.c.2.s8 %v2529_v31 }
 0x112   :  { %1754 = vst [vmem:[#allocation5 + $0x818] sm:$0xff] %v1460_v27  ;;  %v1172_v48 = vcvt.s32.f32 %v878_v41  ;;  %v1173_v49 = vcvt.s32.f32 %v879_v42  ;;  %v881_v50 = vand.u32 255, %v2346_v43  ;;  %v2351_v51 = vunpack.c.3.s8 %v2529_v31 }
 0x113   :  { %1755 = vst [vmem:[#allocation5 + $0x820] sm:$0xff] %v1461_v32  ;;  %v1465_v53 = vmul.f32 0.003921569, %v1171_v44  ;;  %v1174_v54 = vcvt.s32.f32 %v880_v45  ;;  %v882_v55 = vand.u32 255, %v2347_v46  ;;  %v883_v56 = vand.u32 255, %v2350_v47 }
 0x114   :  { %1756 = vst [vmem:[#allocation5 + $0x828] sm:$0xff] %v1462_v36  ;;  %v1466_v57 = vmul.f32 0.003921569, %v1172_v48  ;;  %v1467_v58 = vmul.f32 0.003921569, %v1173_v49  ;;  %v1175_v59 = vcvt.s32.f32 %v881_v50  ;;  %v884_v60 = vand.u32 255, %v2351_v51 }
 0x115   :  { %1757 = vst [vmem:[#allocation5 + $0x830] sm:$0xff] %v1463_v37  ;;  %v1468_v61 = vmul.f32 0.003921569, %v1174_v54  ;;  %v1176_v62 = vcvt.s32.f32 %v882_v55  ;;  %v1177_v63 = vcvt.s32.f32 %v883_v56  ;;  %v2354_v0 = vunpack.c.0.s8 %v2531_v52  ;;  %v2539_v56 = vld [vmem:[#allocation2 + $0x240] sm:$0xff]  }
 0x116   :  { %1758 = vst [vmem:[#allocation5 + $0x838] sm:$0xff] %v1464_v40  ;;  %v1469_v2 = vmul.f32 0.003921569, %v1175_v59  ;;  %v1178_v3 = vcvt.s32.f32 %v884_v60  ;;  %v2355_v4 = vunpack.c.1.s8 %v2531_v52  ;;  %v2358_v5 = vunpack.c.2.s8 %v2531_v52 }
 0x117   :  { %1759 = vst [vmem:[#allocation5 + $0x840] sm:$0xff] %v1465_v53  ;;  %v1470_v6 = vmul.f32 0.003921569, %v1176_v62  ;;  %v1471_v7 = vmul.f32 0.003921569, %v1177_v63  ;;  %v885_v8 = vand.u32 255, %v2354_v0  ;;  %v2359_v9 = vunpack.c.3.s8 %v2531_v52 }
 0x118   :  { %1760 = vst [vmem:[#allocation5 + $0x848] sm:$0xff] %v1466_v57  ;;  %v1472_v10 = vmul.f32 0.003921569, %v1178_v3  ;;  %v886_v11 = vand.u32 255, %v2355_v4  ;;  %v887_v12 = vand.u32 255, %v2358_v5  ;;  %v2362_v13 = vunpack.c.0.s8 %v2533_v1 }
 0x119   :  { %1761 = vst [vmem:[#allocation5 + $0x850] sm:$0xff] %v1467_v58  ;;  %v1179_v14 = vcvt.s32.f32 %v885_v8  ;;  %v888_v15 = vand.u32 255, %v2359_v9  ;;  %v2363_v16 = vunpack.c.1.s8 %v2533_v1  ;;  %v2366_v17 = vunpack.c.2.s8 %v2533_v1  ;;  %v2541_v4 = vld [vmem:[#allocation2 + $0x248] sm:$0xf]  }
 0x11a   :  { %1762 = vst [vmem:[#allocation5 + $0x858] sm:$0xff] %v1468_v61  ;;  %v1180_v18 = vcvt.s32.f32 %v886_v11  ;;  %v1181_v19 = vcvt.s32.f32 %v887_v12  ;;  %v889_v20 = vand.u32 255, %v2362_v13  ;;  %v2367_v21 = vunpack.c.3.s8 %v2533_v1 }
 0x11b   :  { %1763 = vst [vmem:[#allocation5 + $0x860] sm:$0xff] %v1469_v2  ;;  %v1473_v23 = vmul.f32 0.003921569, %v1179_v14  ;;  %v1182_v24 = vcvt.s32.f32 %v888_v15  ;;  %v890_v25 = vand.u32 255, %v2363_v16  ;;  %v891_v26 = vand.u32 255, %v2366_v17 }
 0x11c   :  { %1764 = vst [vmem:[#allocation5 + $0x868] sm:$0xff] %v1470_v6  ;;  %v1474_v27 = vmul.f32 0.003921569, %v1180_v18  ;;  %v1475_v28 = vmul.f32 0.003921569, %v1181_v19  ;;  %v1183_v29 = vcvt.s32.f32 %v889_v20  ;;  %v892_v30 = vand.u32 255, %v2367_v21 }
 0x11d   :  { %1765 = vst [vmem:[#allocation5 + $0x870] sm:$0xff] %v1471_v7  ;;  %v1476_v31 = vmul.f32 0.003921569, %v1182_v24  ;;  %v1184_v32 = vcvt.s32.f32 %v890_v25  ;;  %v1185_v33 = vcvt.s32.f32 %v891_v26  ;;  %v2370_v34 = vunpack.c.0.s8 %v2535_v22 }
 0x11e   :  { %1766 = vst [vmem:[#allocation5 + $0x878] sm:$0xff] %v1472_v10  ;;  %v1477_v36 = vmul.f32 0.003921569, %v1183_v29  ;;  %v1186_v37 = vcvt.s32.f32 %v892_v30  ;;  %v2371_v38 = vunpack.c.1.s8 %v2535_v22  ;;  %v2374_v39 = vunpack.c.2.s8 %v2535_v22 }
 0x11f   :  { %1767 = vst [vmem:[#allocation5 + $0x880] sm:$0xff] %v1473_v23  ;;  %v1478_v40 = vmul.f32 0.003921569, %v1184_v32  ;;  %v1479_v41 = vmul.f32 0.003921569, %v1185_v33  ;;  %v893_v42 = vand.u32 255, %v2370_v34  ;;  %v2375_v43 = vunpack.c.3.s8 %v2535_v22 }
 0x120   :  { %1768 = vst [vmem:[#allocation5 + $0x888] sm:$0xff] %v1474_v27  ;;  %v1480_v44 = vmul.f32 0.003921569, %v1186_v37  ;;  %v894_v45 = vand.u32 255, %v2371_v38  ;;  %v895_v46 = vand.u32 255, %v2374_v39  ;;  %v2378_v47 = vunpack.c.0.s8 %v2537_v35 }
 0x121   :  { %1769 = vst [vmem:[#allocation5 + $0x890] sm:$0xff] %v1475_v28  ;;  %v1187_v48 = vcvt.s32.f32 %v893_v42  ;;  %v896_v49 = vand.u32 255, %v2375_v43  ;;  %v2379_v50 = vunpack.c.1.s8 %v2537_v35  ;;  %v2382_v51 = vunpack.c.2.s8 %v2537_v35 }
 0x122   :  { %1770 = vst [vmem:[#allocation5 + $0x898] sm:$0xff] %v1476_v31  ;;  %v1188_v52 = vcvt.s32.f32 %v894_v45  ;;  %v1189_v53 = vcvt.s32.f32 %v895_v46  ;;  %v897_v54 = vand.u32 255, %v2378_v47  ;;  %v2383_v55 = vunpack.c.3.s8 %v2537_v35 }
 0x123   :  { %1771 = vst [vmem:[#allocation5 + $0x8a0] sm:$0xff] %v1477_v36  ;;  %v1481_v57 = vmul.f32 0.003921569, %v1187_v48  ;;  %v1190_v58 = vcvt.s32.f32 %v896_v49  ;;  %v898_v59 = vand.u32 255, %v2379_v50  ;;  %v899_v60 = vand.u32 255, %v2382_v51 }
 0x124   :  { %1772 = vst [vmem:[#allocation5 + $0x8a8] sm:$0xff] %v1478_v40  ;;  %v1482_v61 = vmul.f32 0.003921569, %v1188_v52  ;;  %v1191_v62 = vcvt.s32.f32 %v897_v54  ;;  %v900_v63 = vand.u32 255, %v2383_v55  ;;  %v1483_v0 = vmul.f32 0.003921569, %v1189_v53 }
 0x125   :  { %1773 = vst [vmem:[#allocation5 + $0x8b0] sm:$0xff] %v1479_v41  ;;  %v1192_v1 = vcvt.s32.f32 %v898_v59  ;;  %v1193_v2 = vcvt.s32.f32 %v899_v60  ;;  %v2386_v3 = vunpack.c.0.s8 %v2539_v56  ;;  %v1484_v5 = vmul.f32 0.003921569, %v1190_v58 }
 0x126   :  { %1774 = vst [vmem:[#allocation5 + $0x8b8] sm:$0xff] %v1480_v44  ;;  %v1194_v6 = vcvt.s32.f32 %v900_v63  ;;  %v2387_v7 = vunpack.c.1.s8 %v2539_v56  ;;  %v2390_v8 = vunpack.c.2.s8 %v2539_v56  ;;  %v1485_v9 = vmul.f32 0.003921569, %v1191_v62 }
 0x127   :  { %1775 = vst [vmem:[#allocation5 + $0x8c0] sm:$0xff] %v1481_v57  ;;  %v901_v10 = vand.u32 255, %v2386_v3  ;;  %v2391_v11 = vunpack.c.3.s8 %v2539_v56  ;;  %v1486_v12 = vmul.f32 0.003921569, %v1192_v1  ;;  %v2394_v15 = vunpack.c.0.s8 %v2541_v4 }
 0x128   :  { %1776 = vst [vmem:[#allocation5 + $0x8c8] sm:$0xff] %v1482_v61  ;;  %v902_v13 = vand.u32 255, %v2387_v7  ;;  %v903_v14 = vand.u32 255, %v2390_v8  ;;  %v1487_v16 = vmul.f32 0.003921569, %v1193_v2  ;;  %v2395_v19 = vunpack.c.1.s8 %v2541_v4 }
 0x129   :  { %1777 = vst [vmem:[#allocation5 + $0x8d0] sm:$0xff] %v1483_v0  ;;  %v1195_v17 = vcvt.s32.f32 %v901_v10  ;;  %v904_v18 = vand.u32 255, %v2391_v11  ;;  %v1488_v20 = vmul.f32 0.003921569, %v1194_v6  ;;  %v905_v23 = vand.u32 255, %v2394_v15 }
 0x12a   :  { %1778 = vst [vmem:[#allocation5 + $0x8d8] sm:$0xff] %v1484_v5  ;;  %v1196_v21 = vcvt.s32.f32 %v902_v13  ;;  %v1197_v22 = vcvt.s32.f32 %v903_v14  ;;  %v906_v26 = vand.u32 255, %v2395_v19 }
 0x12b   :  { %1779 = vst [vmem:[#allocation5 + $0x8e0] sm:$0xff] %v1485_v9  ;;  %v1489_v24 = vmul.f32 0.003921569, %v1195_v17  ;;  %v1198_v25 = vcvt.s32.f32 %v904_v18  ;;  %v1199_v28 = vcvt.s32.f32 %v905_v23 }
 0x12c   :  { %1780 = vst [vmem:[#allocation5 + $0x8e8] sm:$0xff] %v1486_v12  ;;  %v1490_v27 = vmul.f32 0.003921569, %v1196_v21  ;;  %v1491_v29 = vmul.f32 0.003921569, %v1197_v22  ;;  %v1200_v30 = vcvt.s32.f32 %v906_v26 }
 0x12d   :  { %1781 = vst [vmem:[#allocation5 + $0x8f0] sm:$0xff] %v1487_v16  ;;  %v1492_v31 = vmul.f32 0.003921569, %v1198_v25  ;;  %v1493_v32 = vmul.f32 0.003921569, %v1199_v28 }
 0x12e   :  { %1782 = vst [vmem:[#allocation5 + $0x8f8] sm:$0xff] %v1488_v20  ;;  %v1494_v33 = vmul.f32 0.003921569, %v1200_v30 }
 0x12f   :  { %1783 = vst [vmem:[#allocation5 + $0x900] sm:$0xff] %v1489_v24 }
 0x130   :  { %1784 = vst [vmem:[#allocation5 + $0x908] sm:$0xff] %v1490_v27 }
 0x131   :  { %1785 = vst [vmem:[#allocation5 + $0x910] sm:$0xff] %v1491_v29 }
 0x132   :  { %1786 = vst [vmem:[#allocation5 + $0x918] sm:$0xff] %v1492_v31 }
 0x133   :  { %1787 = vst [vmem:[#allocation5 + $0x920] sm:$0xff] %v1493_v32 }
 0x134   :  { %1788 = vst [vmem:[#allocation5 + $0x928] sm:$0xff] %v1494_v33 }
 0x135   :  { %1801 = dma.vmem_to_hbm [thread:$0]  %s1794_s13, 37632, %s1796_s16, [#allocation4], %s2604_s17, %s2604_s17, %s2605_s18  }
 0x136   :  { %2598 = dma.done.wait [#allocation4], 37632  }
 0x137   :  { %2599 = vsyncadd [#allocation4], 4294929664 }
 0x138   :  { %1806 = vsyncpa [#allocation3], 1 }
 0x139   :  { %1807 = vsyncpa [#allocation4], 1 }

</bundles_post_ra>
